<compile_context>
chip_gen: v7x
topology: tpu7x:2x2x1
jax: 0.10.0
libtpu: 0.0.40
codegen_flags: <defaults>
</compile_context>

<pallas_src>
import jax
import jax.numpy as jnp
from jax.experimental import pallas as pl
from jax.experimental.pallas import tpu as pltpu


def _round_up(v, m):
    return ((v + m - 1) // m) * m


def _local_correlation_kernel(edge_ref,
                              gw_ref, gb_ref,
                              tw_ref, tb_ref,
                              pw_ref, pb_ref,
                              ww_ref, wscale_ref, wbias_ref,
                              o_ref):
    # edge_ref:   (TM, K, Cp)  edge features (neighbor - center), channels-last
    # *w_ref:     (Cp, Cp)     1x1 conv weights, pre-transposed to [C_in, C_out]
    # *b_ref:     (1, Cp)      conv biases (f32)
    # wscale/wbias: (1, Cp)    folded (W-conv bias + eval-mode BN) affine (f32)
    # o_ref:      (TM, Cp)     max over K of the W output (lane-dense)
    x = edge_ref[...]                                   # (TM, K, Cp)
    tm, k, cp = x.shape
    x2 = x.reshape(tm * k, cp)                          # layout-trivial (Cp = lanes)

    def conv1x1(w_ref, b_ref):
        y = jnp.dot(x2, w_ref[...], preferred_element_type=jnp.float32)
        return (y + b_ref[...]).reshape(tm, k, cp)      # (TM, K, Cp) f32

    theta = conv1x1(tw_ref, tb_ref)
    phi = conv1x1(pw_ref, pb_ref)
    g = conv1x1(gw_ref, gb_ref)

    # Per-point local attention among the K neighbors (batched over the TM rows).
    f = jnp.einsum('mic,mjc->mij', theta, phi,
                   preferred_element_type=jnp.float32)  # (TM, K, K)
    f = f - jnp.max(f, axis=-1, keepdims=True)
    e = jnp.exp(f)
    attn = e * pl.reciprocal(jnp.sum(e, axis=-1, keepdims=True), approx=True)
    y = jnp.einsum('mij,mjc->mic', attn, g,
                   preferred_element_type=jnp.float32)  # (TM, K, Cp)

    # W: 1x1 conv + folded eval-mode BN, then max over the K neighbors.
    z = jnp.dot(y.reshape(tm * k, cp).astype(ww_ref.dtype), ww_ref[...],
                preferred_element_type=jnp.float32)
    z = (z * wscale_ref[...] + wbias_ref[...]).reshape(tm, k, cp)
    o_ref[...] = jnp.max(z, axis=1).astype(o_ref.dtype)


def local_correlation(x, idx,
                      g_w, g_b, theta_w, theta_b, phi_w, phi_b,
                      W_w, W_b, bn_gamma, bn_beta, bn_mean, bn_var,
                      *, eps=1e-5, tm=128, stream_dtype=None):
    """x: [B, C, N] float; idx: [B, N, K] flat neighbor indices into B*N.

    Returns [B, C, N]. `tm` is the points-per-grid-step tile (sweepable).
    `stream_dtype=jnp.bfloat16` optionally halves HBM traffic of the edge stream
    (f32 accumulation is kept throughout).
    """
    B, C, N = x.shape
    K = idx.shape[-1]
    M = B * N
    Cp = _round_up(max(C, 1), 128)      # lane-dense channel axis

    # --- get_graph_feature_neighbor, produced directly in [M, K, Cp] layout ----
    x_t = jnp.transpose(x, (0, 2, 1)).reshape(M, C)
    if Cp != C:
        x_t = jnp.pad(x_t, ((0, 0), (0, Cp - C)))
    neigh = jnp.take(x_t, idx.reshape(M * K).astype(jnp.int32), axis=0)
    edge = neigh.reshape(M, K, Cp) - x_t[:, None, :]

    # --- tile over M: round tm to a sublane multiple, zero-pad the ragged tail --
    tm = _round_up(min(tm, M), 8)
    Mp = _round_up(M, tm)
    if Mp != M:
        edge = jnp.pad(edge, ((0, Mp - M), (0, 0), (0, 0)))

    # --- pad + pre-transpose conv weights to [C_in, C_out], pad biases ----------
    def prep_w(w):                       # w: [C_out, C_in]
        w = jnp.pad(w, ((0, Cp - C), (0, Cp - C)))
        return jnp.transpose(w, (1, 0))  # -> [C_in, C_out], padded with zeros

    def prep_b(b):
        return jnp.pad(b, (0, Cp - C)).reshape(1, Cp).astype(jnp.float32)

    # Fold eval-mode BN (+ W-conv bias) into a single per-channel affine.
    inv_std = 1.0 / jnp.sqrt(bn_var + eps)
    scale = bn_gamma * inv_std
    bias = W_b * scale + (bn_beta - bn_mean * scale)

    gw, tw, pw, ww = prep_w(g_w), prep_w(theta_w), prep_w(phi_w), prep_w(W_w)
    gb, tb, pb = prep_b(g_b), prep_b(theta_b), prep_b(phi_b)
    w_scale, w_bias = prep_b(scale), prep_b(bias)

    if stream_dtype is not None:
        edge = edge.astype(stream_dtype)
        gw, tw, pw, ww = [a.astype(stream_dtype) for a in (gw, tw, pw, ww)]

    const = lambda i: (0, 0)             # resident constants (weights / affines)
    out = pl.pallas_call(
        _local_correlation_kernel,
        out_shape=jax.ShapeDtypeStruct((Mp, Cp), x.dtype),
        grid_spec=pltpu.PrefetchScalarGridSpec(
            num_scalar_prefetch=0,
            grid=(Mp // tm,),
            in_specs=[
                pl.BlockSpec((tm, K, Cp), lambda i: (i, 0, 0)),   # edge tile
                pl.BlockSpec((Cp, Cp), const), pl.BlockSpec((1, Cp), const),  # g
                pl.BlockSpec((Cp, Cp), const), pl.BlockSpec((1, Cp), const),  # theta
                pl.BlockSpec((Cp, Cp), const), pl.BlockSpec((1, Cp), const),  # phi
                pl.BlockSpec((Cp, Cp), const),                                # W
                pl.BlockSpec((1, Cp), const), pl.BlockSpec((1, Cp), const),   # affine
            ],
            out_specs=pl.BlockSpec((tm, Cp), lambda i: (i, 0)),
        ),
        compiler_params=pltpu.CompilerParams(
            dimension_semantics=("parallel",),        # shards M tiles across TCs
            vmem_limit_bytes=48 * 1024 * 1024),       # fits v7x's 64 MiB / TC
    )(edge, gw, gb, tw, tb, pw, pb, ww, w_scale, w_bias)

    out = out[:M, :C].reshape(B, N, C)
    return jnp.transpose(out, (0, 2, 1))              # [B, C, N]


def reference(x, idx, g_w, g_b, theta_w, theta_b, phi_w, phi_b,
              W_w, W_b, bn_gamma, bn_beta, bn_mean, bn_var, eps=1e-5):
    """Pure-JAX mirror of the PyTorch Local_Correlation forward (eval-mode BN)."""
    B, C, N = x.shape
    K = idx.shape[-1]
    x_t = jnp.transpose(x, (0, 2, 1)).reshape(B * N, C)
    neigh = x_t[idx.reshape(-1)].reshape(B, N, K, C)
    edge = neigh - x_t.reshape(B, N, 1, C)
    feat = jnp.transpose(edge, (0, 3, 1, 2))                       # (B,C,N,K)

    def conv1x1(f, w, b):
        return jnp.einsum('bcnk,dc->bdnk', f, w) + b[None, :, None, None]

    g_x = jnp.transpose(conv1x1(feat, g_w, g_b), (0, 2, 3, 1))         # (B,N,K,C)
    th = jnp.transpose(conv1x1(feat, theta_w, theta_b), (0, 2, 3, 1))  # (B,N,K,C)
    ph = jnp.transpose(conv1x1(feat, phi_w, phi_b), (0, 2, 1, 3))      # (B,N,C,K)
    f = jnp.einsum('bnkc,bncj->bnkj', th, ph)                          # (B,N,K,K)
    attn = jax.nn.softmax(f, axis=-1)
    y = jnp.einsum('bnkj,bnjc->bnkc', attn, g_x)                       # (B,N,K,C)
    y = jnp.transpose(y, (0, 3, 1, 2))                                 # (B,C,N,K)
    z = conv1x1(y, W_w, W_b)
    inv_std = 1.0 / jnp.sqrt(bn_var + eps)
    z = (z - bn_mean[None, :, None, None]) * inv_std[None, :, None, None]
    z = z * bn_gamma[None, :, None, None] + bn_beta[None, :, None, None]
    return jnp.max(z, axis=-1)                                         # (B,C,N)


if __name__ == "__main__":
    B, C, N, K = 2, 4, 16, 8
    key = jax.random.PRNGKey(0)
    ks = jax.random.split(key, 14)

    x = jax.random.normal(ks[0], (B, C, N), dtype=jnp.float32)
    # kNN-style neighbor indices: flat into B*N, neighbors stay within the batch.
    idx = jax.random.randint(ks[1], (B, N, K), 0, N, dtype=jnp.int32)
    idx = idx + (jnp.arange(B, dtype=jnp.int32) * N)[:, None, None]

    s = 1.0 / (C ** 0.5)
    g_w = jax.random.normal(ks[2], (C, C), jnp.float32) * s
    g_b = 0.1 * jax.random.normal(ks[3], (C,), jnp.float32)
    theta_w = jax.random.normal(ks[4], (C, C), jnp.float32) * s
    theta_b = 0.1 * jax.random.normal(ks[5], (C,), jnp.float32)
    phi_w = jax.random.normal(ks[6], (C, C), jnp.float32) * s
    phi_b = 0.1 * jax.random.normal(ks[7], (C,), jnp.float32)
    W_w = jax.random.normal(ks[8], (C, C), jnp.float32) * s
    W_b = 0.1 * jax.random.normal(ks[9], (C,), jnp.float32)
    bn_gamma = 1.0 + 0.1 * jax.random.normal(ks[10], (C,), jnp.float32)
    bn_beta = 0.1 * jax.random.normal(ks[11], (C,), jnp.float32)
    bn_mean = 0.1 * jax.random.normal(ks[12], (C,), jnp.float32)
    bn_var = jnp.abs(jax.random.normal(ks[13], (C,), jnp.float32)) + 0.5

    out = local_correlation(x, idx, g_w, g_b, theta_w, theta_b, phi_w, phi_b,
                            W_w, W_b, bn_gamma, bn_beta, bn_mean, bn_var)
    out = jax.block_until_ready(out)

    ref = reference(x, idx, g_w, g_b, theta_w, theta_b, phi_w, phi_b,
                    W_w, W_b, bn_gamma, bn_beta, bn_mean, bn_var)
    assert out.shape == (B, C, N)
    # approx reciprocal in the in-kernel softmax -> slightly loosened tolerance
    assert jnp.allclose(out, ref, rtol=1e-2, atol=1e-2), (
        f"max abs diff {jnp.max(jnp.abs(out - ref))}")
    print("KERNEL_OK")
</pallas_src>

<mosaic_0001>
module attributes {stable_mosaic.version = 11 : i64} {
  func.func @_local_correlation_kernel(%arg0: i32, %arg1: memref<32x8x128xf32, #tpu.memory_space<vmem>>, %arg2: memref<128x128xf32, #tpu.memory_space<vmem>>, %arg3: memref<1x128xf32, #tpu.memory_space<vmem>>, %arg4: memref<128x128xf32, #tpu.memory_space<vmem>>, %arg5: memref<1x128xf32, #tpu.memory_space<vmem>>, %arg6: memref<128x128xf32, #tpu.memory_space<vmem>>, %arg7: memref<1x128xf32, #tpu.memory_space<vmem>>, %arg8: memref<128x128xf32, #tpu.memory_space<vmem>>, %arg9: memref<1x128xf32, #tpu.memory_space<vmem>>, %arg10: memref<1x128xf32, #tpu.memory_space<vmem>>, %arg11: memref<32x128xf32, #tpu.memory_space<vmem>>) attributes {dimension_semantics = [#tpu.dimension_semantics<parallel>], iteration_bounds = array<i64: 1>, scalar_prefetch = 0 : i64, scratch_operands = 0 : i64, tpu.core_type = #tpu.core_type<tc>, window_params = [{transform_indices = @transform_0, window_bounds = array<i64: 32, 8, 128>}, {pipeline_mode = #tpu.pipeline_mode<synchronous>, transform_indices = @transform_1, window_bounds = array<i64: 128, 128>}, {pipeline_mode = #tpu.pipeline_mode<synchronous>, transform_indices = @transform_2, window_bounds = array<i64: 1, 128>}, {pipeline_mode = #tpu.pipeline_mode<synchronous>, transform_indices = @transform_3, window_bounds = array<i64: 128, 128>}, {pipeline_mode = #tpu.pipeline_mode<synchronous>, transform_indices = @transform_4, window_bounds = array<i64: 1, 128>}, {pipeline_mode = #tpu.pipeline_mode<synchronous>, transform_indices = @transform_5, window_bounds = array<i64: 128, 128>}, {pipeline_mode = #tpu.pipeline_mode<synchronous>, transform_indices = @transform_6, window_bounds = array<i64: 1, 128>}, {pipeline_mode = #tpu.pipeline_mode<synchronous>, transform_indices = @transform_7, window_bounds = array<i64: 128, 128>}, {pipeline_mode = #tpu.pipeline_mode<synchronous>, transform_indices = @transform_8, window_bounds = array<i64: 1, 128>}, {pipeline_mode = #tpu.pipeline_mode<synchronous>, transform_indices = @transform_9, window_bounds = array<i64: 1, 128>}, {transform_indices = @transform_10, window_bounds = array<i64: 32, 128>}]} {
    %c0 = arith.constant 0 : index
    %c0_0 = arith.constant 0 : index
    %c0_1 = arith.constant 0 : index
    %0 = vector.load %arg1[%c0, %c0_0, %c0_1] : memref<32x8x128xf32, #tpu.memory_space<vmem>>, vector<32x8x128xf32>
    %1 = vector.shape_cast %0 : vector<32x8x128xf32> to vector<256x128xf32>
    %c0_2 = arith.constant 0 : index
    %c0_3 = arith.constant 0 : index
    %2 = vector.load %arg4[%c0_2, %c0_3] : memref<128x128xf32, #tpu.memory_space<vmem>>, vector<128x128xf32>
    %cst = arith.constant dense<0.000000e+00> : vector<256x128xf32>
    %3 = tpu.matmul %1, %2, %cst {dimension_numbers = #tpu.dot_dimension_numbers<[1], [0], [0], [1], [0, 0, 1, 1], [], []>} : vector<256x128xf32>, vector<128x128xf32>, vector<256x128xf32> -> vector<256x128xf32>
    %c0_4 = arith.constant 0 : index
    %c0_5 = arith.constant 0 : index
    %4 = vector.load %arg5[%c0_4, %c0_5] : memref<1x128xf32, #tpu.memory_space<vmem>>, vector<1x128xf32>
    %5 = vector.broadcast %4 : vector<1x128xf32> to vector<256x128xf32>
    %6 = arith.addf %3, %5 : vector<256x128xf32>
    %7 = vector.shape_cast %6 : vector<256x128xf32> to vector<32x8x128xf32>
    %c0_6 = arith.constant 0 : index
    %c0_7 = arith.constant 0 : index
    %8 = vector.load %arg6[%c0_6, %c0_7] : memref<128x128xf32, #tpu.memory_space<vmem>>, vector<128x128xf32>
    %cst_8 = arith.constant dense<0.000000e+00> : vector<256x128xf32>
    %9 = tpu.matmul %1, %8, %cst_8 {dimension_numbers = #tpu.dot_dimension_numbers<[1], [0], [0], [1], [0, 0, 1, 1], [], []>} : vector<256x128xf32>, vector<128x128xf32>, vector<256x128xf32> -> vector<256x128xf32>
    %c0_9 = arith.constant 0 : index
    %c0_10 = arith.constant 0 : index
    %10 = vector.load %arg7[%c0_9, %c0_10] : memref<1x128xf32, #tpu.memory_space<vmem>>, vector<1x128xf32>
    %11 = vector.broadcast %10 : vector<1x128xf32> to vector<256x128xf32>
    %12 = arith.addf %9, %11 : vector<256x128xf32>
    %13 = vector.shape_cast %12 : vector<256x128xf32> to vector<32x8x128xf32>
    %c0_11 = arith.constant 0 : index
    %c0_12 = arith.constant 0 : index
    %14 = vector.load %arg2[%c0_11, %c0_12] : memref<128x128xf32, #tpu.memory_space<vmem>>, vector<128x128xf32>
    %cst_13 = arith.constant dense<0.000000e+00> : vector<256x128xf32>
    %15 = tpu.matmul %1, %14, %cst_13 {dimension_numbers = #tpu.dot_dimension_numbers<[1], [0], [0], [1], [0, 0, 1, 1], [], []>} : vector<256x128xf32>, vector<128x128xf32>, vector<256x128xf32> -> vector<256x128xf32>
    %c0_14 = arith.constant 0 : index
    %c0_15 = arith.constant 0 : index
    %16 = vector.load %arg3[%c0_14, %c0_15] : memref<1x128xf32, #tpu.memory_space<vmem>>, vector<1x128xf32>
    %17 = vector.broadcast %16 : vector<1x128xf32> to vector<256x128xf32>
    %18 = arith.addf %15, %17 : vector<256x128xf32>
    %19 = vector.shape_cast %18 : vector<256x128xf32> to vector<32x8x128xf32>
    "tpu.trace_start"() <{level = 10 : i32, message = "mic,mjc->mij"}> : () -> ()
    %cst_16 = arith.constant dense<0.000000e+00> : vector<32x8x8xf32>
    %20 = tpu.matmul %7, %13, %cst_16 {dimension_numbers = #tpu.dot_dimension_numbers<[2], [2], [1], [1], [0, 0, 0, 1, 1, 1], [0], [0]>} : vector<32x8x128xf32>, vector<32x8x128xf32>, vector<32x8x8xf32> -> vector<32x8x8xf32>
    "tpu.trace_stop"() : () -> ()
    %cst_17 = arith.constant dense<0xFF800000> : vector<32x8xf32>
    %21 = vector.multi_reduction <maximumf>, %20, %cst_17 [2] : vector<32x8x8xf32> to vector<32x8xf32>
    %22 = vector.shape_cast %21 : vector<32x8xf32> to vector<32x8x1xf32>
    %23 = vector.broadcast %22 : vector<32x8x1xf32> to vector<32x8x8xf32>
    %24 = arith.subf %20, %23 : vector<32x8x8xf32>
    %25 = math.exp %24 : vector<32x8x8xf32>
    %cst_18 = arith.constant dense<0.000000e+00> : vector<32x8xf32>
    %26 = vector.multi_reduction <add>, %25, %cst_18 [2] : vector<32x8x8xf32> to vector<32x8xf32>
    %27 = vector.shape_cast %26 : vector<32x8xf32> to vector<32x8x1xf32>
    %28 = tpu.reciprocal %27 {approx = true} : vector<32x8x1xf32> -> vector<32x8x1xf32>
    %29 = vector.broadcast %28 : vector<32x8x1xf32> to vector<32x8x8xf32>
    %30 = arith.mulf %25, %29 : vector<32x8x8xf32>
    "tpu.trace_start"() <{level = 10 : i32, message = "mij,mjc->mic"}> : () -> ()
    %cst_19 = arith.constant dense<0.000000e+00> : vector<32x8x128xf32>
    %31 = tpu.matmul %30, %19, %cst_19 {dimension_numbers = #tpu.dot_dimension_numbers<[2], [1], [1], [2], [0, 0, 0, 1, 1, 2], [0], [0]>} : vector<32x8x8xf32>, vector<32x8x128xf32>, vector<32x8x128xf32> -> vector<32x8x128xf32>
    "tpu.trace_stop"() : () -> ()
    %32 = vector.shape_cast %31 : vector<32x8x128xf32> to vector<256x128xf32>
    %c0_20 = arith.constant 0 : index
    %c0_21 = arith.constant 0 : index
    %33 = vector.load %arg8[%c0_20, %c0_21] : memref<128x128xf32, #tpu.memory_space<vmem>>, vector<128x128xf32>
    %cst_22 = arith.constant dense<0.000000e+00> : vector<256x128xf32>
    %34 = tpu.matmul %32, %33, %cst_22 {dimension_numbers = #tpu.dot_dimension_numbers<[1], [0], [0], [1], [0, 0, 1, 1], [], []>} : vector<256x128xf32>, vector<128x128xf32>, vector<256x128xf32> -> vector<256x128xf32>
    %c0_23 = arith.constant 0 : index
    %c0_24 = arith.constant 0 : index
    %35 = vector.load %arg9[%c0_23, %c0_24] : memref<1x128xf32, #tpu.memory_space<vmem>>, vector<1x128xf32>
    %36 = vector.broadcast %35 : vector<1x128xf32> to vector<256x128xf32>
    %37 = arith.mulf %34, %36 : vector<256x128xf32>
    %c0_25 = arith.constant 0 : index
    %c0_26 = arith.constant 0 : index
    %38 = vector.load %arg10[%c0_25, %c0_26] : memref<1x128xf32, #tpu.memory_space<vmem>>, vector<1x128xf32>
    %39 = vector.broadcast %38 : vector<1x128xf32> to vector<256x128xf32>
    %40 = arith.addf %37, %39 : vector<256x128xf32>
    %41 = vector.shape_cast %40 : vector<256x128xf32> to vector<32x8x128xf32>
    %cst_27 = arith.constant dense<0xFF800000> : vector<32x128xf32>
    %42 = vector.multi_reduction <maximumf>, %41, %cst_27 [1] : vector<32x8x128xf32> to vector<32x128xf32>
    %c0_28 = arith.constant 0 : index
    %c0_29 = arith.constant 0 : index
    %43 = vector.load %arg11[%c0_28, %c0_29] : memref<32x128xf32, #tpu.memory_space<vmem>>, vector<32x128xf32>
    tpu.vector_store %arg11[%c0_28, %c0_29], %42 {strides = array<i32>} : memref<32x128xf32, #tpu.memory_space<vmem>>, vector<32x128xf32>,
    return
  }
  func.func @transform_0(%arg0: i32) -> (i32, i32, i32) {
    %c0_i32 = arith.constant 0 : i32
    %c0_i32_0 = arith.constant 0 : i32
    %c0_i32_1 = arith.constant 0 : i32
    return %arg0, %c0_i32, %c0_i32_0 : i32, i32, i32
  }
  func.func @transform_1(%arg0: i32) -> (i32, i32) {
    %c0_i32 = arith.constant 0 : i32
    %c0_i32_0 = arith.constant 0 : i32
    %c0_i32_1 = arith.constant 0 : i32
    return %c0_i32, %c0_i32_0 : i32, i32
  }
  func.func @transform_2(%arg0: i32) -> (i32, i32) {
    %c0_i32 = arith.constant 0 : i32
    %c0_i32_0 = arith.constant 0 : i32
    %c0_i32_1 = arith.constant 0 : i32
    return %c0_i32, %c0_i32_0 : i32, i32
  }
  func.func @transform_3(%arg0: i32) -> (i32, i32) {
    %c0_i32 = arith.constant 0 : i32
    %c0_i32_0 = arith.constant 0 : i32
    %c0_i32_1 = arith.constant 0 : i32
    return %c0_i32, %c0_i32_0 : i32, i32
  }
  func.func @transform_4(%arg0: i32) -> (i32, i32) {
    %c0_i32 = arith.constant 0 : i32
    %c0_i32_0 = arith.constant 0 : i32
    %c0_i32_1 = arith.constant 0 : i32
    return %c0_i32, %c0_i32_0 : i32, i32
  }
  func.func @transform_5(%arg0: i32) -> (i32, i32) {
    %c0_i32 = arith.constant 0 : i32
    %c0_i32_0 = arith.constant 0 : i32
    %c0_i32_1 = arith.constant 0 : i32
    return %c0_i32, %c0_i32_0 : i32, i32
  }
  func.func @transform_6(%arg0: i32) -> (i32, i32) {
    %c0_i32 = arith.constant 0 : i32
    %c0_i32_0 = arith.constant 0 : i32
    %c0_i32_1 = arith.constant 0 : i32
    return %c0_i32, %c0_i32_0 : i32, i32
  }
  func.func @transform_7(%arg0: i32) -> (i32, i32) {
    %c0_i32 = arith.constant 0 : i32
    %c0_i32_0 = arith.constant 0 : i32
    %c0_i32_1 = arith.constant 0 : i32
    return %c0_i32, %c0_i32_0 : i32, i32
  }
  func.func @transform_8(%arg0: i32) -> (i32, i32) {
    %c0_i32 = arith.constant 0 : i32
    %c0_i32_0 = arith.constant 0 : i32
    %c0_i32_1 = arith.constant 0 : i32
    return %c0_i32, %c0_i32_0 : i32, i32
  }
  func.func @transform_9(%arg0: i32) -> (i32, i32) {
    %c0_i32 = arith.constant 0 : i32
    %c0_i32_0 = arith.constant 0 : i32
    %c0_i32_1 = arith.constant 0 : i32
    return %c0_i32, %c0_i32_0 : i32, i32
  }
  func.func @transform_10(%arg0: i32) -> (i32, i32) {
    %c0_i32 = arith.constant 0 : i32
    %c0_i32_0 = arith.constant 0 : i32
    return %arg0, %c0_i32 : i32, i32
  }
}

</mosaic_0001>

<bundles_post_ra>
// kernel: tpu_custom_call.1
= control target key start
LH: loop header
LB: loop body
LE: loop exit
PB: predicated region body
PF: predicated region fallthrough
CT: control target
= control target key end

     0   :  { %15 = vsyncpa [#allocation3], 0  ;;  %s9035_s0 = inlined_call_operand.hbm [shape: f32[32,8,128], index: 0, kind: input, shape index: {}]   ;;  %s9036_s1 = inlined_call_operand.hbm [shape: f32[128,128], index: 1, kind: input, shape index: {}]   ;;  %s9037_s2 = inlined_call_operand.vmem [shape: f32[1,128], index: 2, kind: input, shape index: {}]   ;;  %s9038_s3 = inlined_call_operand.hbm [shape: f32[128,128], index: 3, kind: input, shape index: {}]   ;;  %s9039_s4 = inlined_call_operand.vmem [shape: f32[1,128], index: 4, kind: input, shape index: {}]   ;;  %s9040_s5 = inlined_call_operand.hbm [shape: f32[128,128], index: 5, kind: input, shape index: {}]   ;;  %s9041_s6 = inlined_call_operand.vmem [shape: f32[1,128], index: 6, kind: input, shape index: {}]   ;;  %s9042_s7 = inlined_call_operand.hbm [shape: f32[128,128], index: 7, kind: input, shape index: {}]   ;;  %s9043_s8 = inlined_call_operand.vmem [shape: f32[1,128], index: 8, kind: input, shape index: {}]   ;;  %s9044_s9 = inlined_call_operand.vmem [shape: f32[1,128], index: 9, kind: input, shape index: {}]   ;;  %s9045_s10 = inlined_call_operand.hbm [shape: f32[32,128], index: 10, kind: output, shape index: {}]  }
   0x1   :  { %16 = vsyncpa [#allocation6], 0 }
   0x2   :  { %17 = vsyncpa [#allocation9], 0 }
   0x3   :  { %18 = vsyncpa [#allocation4], 0  ;;  %s7834_s13 = smov [#allocation5]   ;;  %s7835_s15 = smov [#allocation8]  }
   0x4   :  { %s36_s14 = sshll.u32 %s7834_s13, 4  ;;  %s64_s16 = sshll.u32 %s7835_s15, 4  ;;  %s37_s14 = int_to_ptr.vmem [resolvable:$true] %s36_s14  ;;  %s7899_s16 = int_to_ptr.vmem [resolvable:$true] %s64_s16 }
   0x5   :  { %s7694_s19 = scalar_lea.hbm %s9036_s1, 2048 }
   0x6   :  { %p7695_p0 = scmp.ne.s32.totalorder %s9036_s1, %s7694_s19  ;;  %p7698_p1 = scmp.lt.u32.totalorder %s7694_s19, %s9036_s1 }
   0x8   :  { %p7700_p2 = pnand %p7698_p1, %p7695_p0 }
   0xa   :  { %7703 = shalt.err (!%p7700_p2)
}
   0xb   :  { %s7704_s24 = scalar_lea.vmem %s37_s14, 2048  ;;  %p7709_p4 = scmp.lt.s32.totalorder %s37_s14, %s37_s14 }
   0xc   :  { %p7705_p3 = scmp.ne.s32.totalorder %s37_s14, %s7704_s24  ;;  %p7710_p5 = scmp.lt.s32.totalorder %s7704_s24, %s7704_s24 }
   0xe   :  { %p7711_p6 = por %p7710_p5, %p7709_p4 }
  0x10   :  { %p7712_p7 = pnand %p7711_p6, %p7705_p3 }
  0x12   :  { %7715 = shalt.err (!%p7712_p7)
}
  0x13   :  { %s7836_s25 = smov 128   ;;  %s7837_s26 = smov 8  }
  0x14   :  { %42 = dma.hbm_to_vmem [thread:$0]  %s9036_s1, 2048, %s37_s14, [#allocation6], %s7836_s25, %s7836_s25, %s7837_s26  }
  0x15   :  { %s7716_s11 = scalar_lea.hbm %s9040_s5, 2048 }
  0x16   :  { %p7717_p8 = scmp.ne.s32.totalorder %s9040_s5, %s7716_s11  ;;  %p7720_p9 = scmp.lt.u32.totalorder %s7716_s11, %s9040_s5 }
  0x18   :  { %p7722_p10 = pnand %p7720_p9, %p7717_p8 }
  0x1a   :  { %7725 = shalt.err (!%p7722_p10)
}
  0x1b   :  { %s7726_s18 = scalar_lea.vmem %s7899_s16, 2048  ;;  %p7731_p12 = scmp.lt.s32.totalorder %s7899_s16, %s7899_s16 }
  0x1c   :  { %p7727_p11 = scmp.ne.s32.totalorder %s7899_s16, %s7726_s18  ;;  %p7732_p13 = scmp.lt.s32.totalorder %s7726_s18, %s7726_s18 }
  0x1e   :  { %p7733_p0 = por %p7732_p13, %p7731_p12 }
  0x20   :  { %p7734_p1 = pnand %p7733_p0, %p7727_p11 }
  0x22   :  { %7737 = shalt.err (!%p7734_p1)
}
  0x23   :  { %70 = dma.hbm_to_vmem [thread:$0]  %s9040_s5, 2048, %s7899_s16, [#allocation9], %s7836_s25, %s7836_s25, %s7837_s26  }
  0x24   :  { %s7838_s19 = smov [#allocation2]   ;;  %s7839_s21 = smov [#allocation7]  }
  0x25   :  { %s24_s20 = sshll.u32 %s7838_s19, 4  ;;  %s50_s22 = sshll.u32 %s7839_s21, 4  ;;  %s25_s20 = int_to_ptr.vmem [resolvable:$true] %s24_s20  ;;  %s7936_s22 = int_to_ptr.vmem [resolvable:$true] %s50_s22 }
  0x26   :  { %s7738_s27 = scalar_lea.hbm %s9035_s0, 4096 }
  0x27   :  { %p7739_p2 = scmp.ne.s32.totalorder %s9035_s0, %s7738_s27  ;;  %p7742_p3 = scmp.lt.u32.totalorder %s7738_s27, %s9035_s0 }
  0x29   :  { %p7744_p4 = pnand %p7742_p3, %p7739_p2 }
  0x2b   :  { %7747 = shalt.err (!%p7744_p4)
}
  0x2c   :  { %s7748_s5 = scalar_lea.vmem %s25_s20, 4096  ;;  %p7753_p6 = scmp.lt.s32.totalorder %s25_s20, %s25_s20 }
  0x2d   :  { %p7749_p5 = scmp.ne.s32.totalorder %s25_s20, %s7748_s5  ;;  %p7754_p7 = scmp.lt.s32.totalorder %s7748_s5, %s7748_s5 }
  0x2f   :  { %p7755_p8 = por %p7754_p7, %p7753_p6 }
  0x31   :  { %p7756_p9 = pnand %p7755_p8, %p7749_p5 }
  0x33   :  { %7759 = shalt.err (!%p7756_p9)
}
  0x34   :  { %30 = dma.hbm_to_vmem [thread:$0]  %s9035_s0, 4096, %s25_s20, [#allocation3], %s7836_s25, %s7836_s25, %s7837_s26  }
  0x35   :  { %s7760_s17 = scalar_lea.hbm %s9038_s3, 2048 }
  0x36   :  { %p7761_p10 = scmp.ne.s32.totalorder %s9038_s3, %s7760_s17  ;;  %p7764_p11 = scmp.lt.u32.totalorder %s7760_s17, %s9038_s3 }
  0x38   :  { %p7766_p12 = pnand %p7764_p11, %p7761_p10 }
  0x3a   :  { %7769 = shalt.err (!%p7766_p12)
}
  0x3b   :  { %s7770_s21 = scalar_lea.vmem %s7936_s22, 2048  ;;  %p7775_p0 = scmp.lt.s32.totalorder %s7936_s22, %s7936_s22 }
  0x3c   :  { %p7771_p13 = scmp.ne.s32.totalorder %s7936_s22, %s7770_s21  ;;  %p7776_p1 = scmp.lt.s32.totalorder %s7770_s21, %s7770_s21 }
  0x3e   :  { %p7777_p2 = por %p7776_p1, %p7775_p0 }
  0x40   :  { %p7778_p3 = pnand %p7777_p2, %p7771_p13 }
  0x42   :  { %7781 = shalt.err (!%p7778_p3)
}
  0x43   :  { %56 = dma.hbm_to_vmem [thread:$0]  %s9038_s3, 2048, %s7936_s22, [#allocation6], %s7836_s25, %s7836_s25, %s7837_s26  }
  0x44   :  { %s7840_s23 = smov [#allocation10]   ;;  %s7782_s29 = scalar_lea.hbm %s9042_s7, 2048 }
  0x45   :  { %s78_s24 = sshll.u32 %s7840_s23, 4  ;;  %p7783_p4 = scmp.ne.s32.totalorder %s9042_s7, %s7782_s29  ;;  %s79_s24 = int_to_ptr.vmem [resolvable:$true] %s78_s24 }
  0x46   :  { %p7786_p5 = scmp.lt.u32.totalorder %s7782_s29, %s9042_s7 }
  0x48   :  { %p7788_p6 = pnand %p7786_p5, %p7783_p4 }
  0x4a   :  { %7791 = shalt.err (!%p7788_p6)
}
  0x4b   :  { %s7792_s12 = scalar_lea.vmem %s79_s24, 2048  ;;  %p7797_p8 = scmp.lt.s32.totalorder %s79_s24, %s79_s24 }
  0x4c   :  { %p7793_p7 = scmp.ne.s32.totalorder %s79_s24, %s7792_s12  ;;  %p7798_p9 = scmp.lt.s32.totalorder %s7792_s12, %s7792_s12 }
  0x4e   :  { %p7799_p10 = por %p7798_p9, %p7797_p8 }
  0x50   :  { %p7800_p11 = pnand %p7799_p10, %p7793_p7 }
  0x52   :  { %7803 = shalt.err (!%p7800_p11)
}
  0x53   :  { %84 = dma.hbm_to_vmem [thread:$0]  %s9042_s7, 2048, %s79_s24, [#allocation9], %s7836_s25, %s7836_s25, %s7837_s26  }
  0x54   :  { %7826 = dma.done.wait [#allocation3], 4096  }
  0x55   :  { %7827 = vsyncadd [#allocation3], 4294963200 }
  0x56   :  { %7828 = dma.done.wait [#allocation6], 4096  }
  0x57   :  { %7829 = vsyncadd [#allocation6], 4294963200 }
  0x58   :  { %7830 = dma.done.wait [#allocation9], 4096  }
  0x59   :  { %7831 = vsyncadd [#allocation9], 4294963200  ;;  %v384_v0 = vld [vmem:[#allocation8] sm:$0xff]  ;;  %v385_v1 = vld [vmem:[#allocation8 + $0x8] sm:$0xff]  ;;  %vm7842_vm0 = vmmov 0   ;;  %vm3120_vm1 = vcmask 64512  }
  0x5a   :  { %v136_v2 = vld [vmem:[#allocation7] sm:$0xff]  ;;  %v7443_v3 = vpack.c.bf16 %v385_v1, %v384_v0  ;;  %v137_v4 = vld [vmem:[#allocation7 + $0x8] sm:$0xff]  ;;  %v386_v5 = vld [vmem:[#allocation8 + $0x10] sm:$0xff]  ;;  %vm6352_vm2 = vcmask 1041409   ;;  %vm6354_vm3 = vcmask 1042434   ;;  %vm6356_vm4 = vcmask 1043459  }
  0x5b   :  { %v387_v6 = vld [vmem:[#allocation8 + $0x18] sm:$0xff]  ;;  %v7411_v7 = vpack.c.bf16 %v137_v4, %v136_v2  ;;  %v138_v9 = vld [vmem:[#allocation7 + $0x10] sm:$0xff]  ;;  %v388_v11 = vld [vmem:[#allocation8 + $0x20] sm:$0xff]  ;;  %vm6358_vm5 = vcmask 1044484   ;;  %vm6360_vm6 = vcmask 1045509   ;;  %vm6362_vm7 = vcmask 1046534  }
  0x5c   :  { %v7447_v8 = vpack.c.bf16 %v387_v6, %v386_v5  ;;  %v139_v10 = vld [vmem:[#allocation7 + $0x18] sm:$0xff]  ;;  %7444 = vmatprep.subr.bf16.mxu1 %v7443_v3  ;;  %v389_v13 = vld [vmem:[#allocation8 + $0x28] sm:$0xff]  ;;  %v140_v14 = vld [vmem:[#allocation7 + $0x20] sm:$0xff]  ;;  %vm6364_vm8 = vcmask 1047559  }
  0x5d   :  { %v7415_v12 = vpack.c.bf16 %v139_v10, %v138_v9  ;;  %v141_v15 = vld [vmem:[#allocation7 + $0x28] sm:$0xff]  ;;  %7446 = vmatpush3.bf16.msra.mxu1 %v7443_v3  ;;  %7412 = vmatprep.subr.bf16.mxu0 %v7411_v7  ;;  %v7451_v16 = vpack.c.bf16 %v389_v13, %v388_v11  ;;  %v390_v18 = vld [vmem:[#allocation8 + $0x30] sm:$0xff]  ;;  %v391_v19 = vld [vmem:[#allocation8 + $0x38] sm:$0xff] }
  0x5e   :  { %7414 = vmatpush3.bf16.msra.mxu0 %v7411_v7  ;;  %7448 = vmatprep.subr.bf16.mxu1 %v7447_v8  ;;  %v7419_v17 = vpack.c.bf16 %v141_v15, %v140_v14  ;;  %v142_v20 = vld [vmem:[#allocation7 + $0x30] sm:$0xff]  ;;  %v143_v21 = vld [vmem:[#allocation7 + $0x38] sm:$0xff]  ;;  %v7455_v22 = vpack.c.bf16 %v391_v19, %v390_v18  ;;  %v392_v24 = vld [vmem:[#allocation8 + $0x40] sm:$0xff] }
  0x5f   :  { %7416 = vmatprep.subr.bf16.mxu0 %v7415_v12  ;;  %v7423_v23 = vpack.c.bf16 %v143_v21, %v142_v20  ;;  %v393_v25 = vld [vmem:[#allocation8 + $0x48] sm:$0xff]  ;;  %v7988_v26 = vld [vmem:[#allocation2] sm:$0xff]  ;;  %v394_v31 = vld [vmem:[#allocation8 + $0x50] sm:$0xff] }
  0x60   :  { %v144_v27 = vld [vmem:[#allocation7 + $0x40] sm:$0xff]  ;;  %v145_v28 = vld [vmem:[#allocation7 + $0x48] sm:$0xff]  ;;  %6883 = vmatprep.mubr.f32.mxu1 %v7988_v26  ;;  %6803 = vmatprep.mubr.f32.mxu0 %v7988_v26  ;;  %v7459_v29 = vpack.c.bf16 %v393_v25, %v392_v24  ;;  %v395_v32 = vld [vmem:[#allocation8 + $0x58] sm:$0xff] }
  0x61   :  { %7450 = vmatpush3.bf16.msra.mxu1 %v7447_v8  ;;  %v7427_v30 = vpack.c.bf16 %v145_v28, %v144_v27  ;;  %v146_v33 = vld [vmem:[#allocation7 + $0x50] sm:$0xff]  ;;  %v147_v34 = vld [vmem:[#allocation7 + $0x58] sm:$0xff]  ;;  %v7463_v35 = vpack.c.bf16 %v395_v32, %v394_v31  ;;  %v396_v37 = vld [vmem:[#allocation8 + $0x60] sm:$0xff] }
  0x62   :  { %7418 = vmatpush3.bf16.msra.mxu0 %v7415_v12  ;;  %7452 = vmatprep.subr.bf16.mxu1 %v7451_v16  ;;  %v7431_v36 = vpack.c.bf16 %v147_v34, %v146_v33  ;;  %v397_v38 = vld [vmem:[#allocation8 + $0x68] sm:$0xff]  ;;  %v148_v39 = vld [vmem:[#allocation7 + $0x60] sm:$0xff]  ;;  %v398_v43 = vld [vmem:[#allocation8 + $0x70] sm:$0xff] }
  0x63   :  { %7420 = vmatprep.subr.bf16.mxu0 %v7419_v17  ;;  %v149_v40 = vld [vmem:[#allocation7 + $0x68] sm:$0xff]  ;;  %v7467_v41 = vpack.c.bf16 %v397_v38, %v396_v37  ;;  %v399_v44 = vld [vmem:[#allocation8 + $0x78] sm:$0xff]  ;;  %v150_v45 = vld [vmem:[#allocation7 + $0x70] sm:$0xff] }
  0x64   :  { %v7435_v42 = vpack.c.bf16 %v149_v40, %v148_v39  ;;  %v151_v46 = vld [vmem:[#allocation7 + $0x78] sm:$0xff]  ;;  %v7471_v47 = vpack.c.bf16 %v399_v44, %v398_v43  ;;  %v632_v49 = vld [vmem:[#allocation5] sm:$0xff]  ;;  %v633_v50 = vld [vmem:[#allocation5 + $0x8] sm:$0xff] }
  0x65   :  { %7454 = vmatpush3.bf16.msra.mxu1 %v7451_v16  ;;  %v7439_v48 = vpack.c.bf16 %v151_v46, %v150_v45  ;;  %v7475_v51 = vpack.c.bf16 %v633_v50, %v632_v49  ;;  %v634_v52 = vld [vmem:[#allocation5 + $0x10] sm:$0xff]  ;;  %v635_v53 = vld [vmem:[#allocation5 + $0x18] sm:$0xff]  ;;  %v7992_v54 = vld [vmem:[#allocation2 + $0x8] sm:$0xff] }
  0x66   :  { %7422 = vmatpush3.bf16.msra.mxu0 %v7419_v17  ;;  %7456 = vmatprep.subr.bf16.mxu1 %v7455_v22  ;;  %v7994_v55 = vld [vmem:[#allocation2 + $0x10] sm:$0xff]  ;;  %v7479_v56 = vpack.c.bf16 %v635_v53, %v634_v52  ;;  %v636_v57 = vld [vmem:[#allocation5 + $0x20] sm:$0xff]  ;;  %v637_v58 = vld [vmem:[#allocation5 + $0x28] sm:$0xff] }
  0x67   :  { %7424 = vmatprep.subr.bf16.mxu0 %v7423_v23  ;;  %v7999_v59 = vld [vmem:[#allocation2 + $0x18] sm:$0xff]  ;;  %v8002_v60 = vld [vmem:[#allocation2 + $0x20] sm:$0xff]  ;;  %v7483_v61 = vpack.c.bf16 %v637_v58, %v636_v57  ;;  %v638_v62 = vld [vmem:[#allocation5 + $0x30] sm:$0xff] }
  0x68   :  { %v639_v63 = vld [vmem:[#allocation5 + $0x38] sm:$0xff]  ;;  %v8007_v0 = vld [vmem:[#allocation2 + $0x28] sm:$0xff]  ;;  %v8010_v1 = vld [vmem:[#allocation2 + $0x30] sm:$0xff] }
  0x69   :  { %7458 = vmatpush3.bf16.msra.mxu1 %v7455_v22  ;;  %v7487_v2 = vpack.c.bf16 %v639_v63, %v638_v62  ;;  %v640_v3 = vld [vmem:[#allocation5 + $0x40] sm:$0xff]  ;;  %v641_v4 = vld [vmem:[#allocation5 + $0x48] sm:$0xff]  ;;  %v8015_v5 = vld [vmem:[#allocation2 + $0x38] sm:$0xff] }
  0x6a   :  { %7426 = vmatpush3.bf16.msra.mxu0 %v7423_v23  ;;  %7460 = vmatprep.subr.bf16.mxu1 %v7459_v29  ;;  %v8018_v6 = vld [vmem:[#allocation2 + $0x40] sm:$0xff]  ;;  %v7491_v7 = vpack.c.bf16 %v641_v4, %v640_v3  ;;  %v642_v8 = vld [vmem:[#allocation5 + $0x50] sm:$0xff]  ;;  %v643_v9 = vld [vmem:[#allocation5 + $0x58] sm:$0xff] }
  0x6b   :  { %7428 = vmatprep.subr.bf16.mxu0 %v7427_v30  ;;  %v8023_v10 = vld [vmem:[#allocation2 + $0x48] sm:$0xff]  ;;  %v8026_v11 = vld [vmem:[#allocation2 + $0x50] sm:$0xff]  ;;  %v7495_v12 = vpack.c.bf16 %v643_v9, %v642_v8  ;;  %v644_v13 = vld [vmem:[#allocation5 + $0x60] sm:$0xff] }
  0x6c   :  { %v645_v14 = vld [vmem:[#allocation5 + $0x68] sm:$0xff]  ;;  %v8031_v15 = vld [vmem:[#allocation2 + $0x58] sm:$0xff]  ;;  %v8034_v16 = vld [vmem:[#allocation2 + $0x60] sm:$0xff] }
  0x6d   :  { %7462 = vmatpush3.bf16.msra.mxu1 %v7459_v29  ;;  %v7499_v17 = vpack.c.bf16 %v645_v14, %v644_v13  ;;  %v646_v18 = vld [vmem:[#allocation5 + $0x70] sm:$0xff]  ;;  %v647_v19 = vld [vmem:[#allocation5 + $0x78] sm:$0xff]  ;;  %v8039_v20 = vld [vmem:[#allocation2 + $0x68] sm:$0xff] }
  0x6e   :  { %7430 = vmatpush3.bf16.msra.mxu0 %v7427_v30  ;;  %7464 = vmatprep.subr.bf16.mxu1 %v7463_v35  ;;  %v8042_v21 = vld [vmem:[#allocation2 + $0x70] sm:$0xff]  ;;  %v7503_v22 = vpack.c.bf16 %v647_v19, %v646_v18  ;;  %v8047_v23 = vld [vmem:[#allocation2 + $0x78] sm:$0xff]  ;;  %v8050_v24 = vld [vmem:[#allocation2 + $0x80] sm:$0xff] }
  0x6f   :  { %7432 = vmatprep.subr.bf16.mxu0 %v7431_v36  ;;  %v121_v25 = vld [vmem:[#allocation2 + $0x88] sm:$0xff]  ;;  %v122_v27 = vld [vmem:[#allocation2 + $0x90] sm:$0xff]  ;;  %v123_v28 = vld [vmem:[#allocation2 + $0x98] sm:$0xff] }
  0x70   :  { %v124_v29 = vld [vmem:[#allocation2 + $0xa0] sm:$0xff]  ;;  %v125_v30 = vld [vmem:[#allocation2 + $0xa8] sm:$0xff]  ;;  %v126_v31 = vld [vmem:[#allocation2 + $0xb0] sm:$0xff] }
  0x71   :  { %7466 = vmatpush3.bf16.msra.mxu1 %v7463_v35  ;;  %v127_v32 = vld [vmem:[#allocation2 + $0xb8] sm:$0xff]  ;;  %v128_v33 = vld [vmem:[#allocation2 + $0xc0] sm:$0xff]  ;;  %v129_v34 = vld [vmem:[#allocation2 + $0xc8] sm:$0xff] }
  0x72   :  { %7434 = vmatpush3.bf16.msra.mxu0 %v7431_v36  ;;  %7468 = vmatprep.subr.bf16.mxu1 %v7467_v41  ;;  %v130_v35 = vld [vmem:[#allocation2 + $0xd0] sm:$0xff]  ;;  %v131_v36 = vld [vmem:[#allocation2 + $0xd8] sm:$0xff]  ;;  %v132_v37 = vld [vmem:[#allocation2 + $0xe0] sm:$0xff] }
  0x73   :  { %7436 = vmatprep.subr.bf16.mxu0 %v7435_v42  ;;  %v133_v38 = vld [vmem:[#allocation2 + $0xe8] sm:$0xff]  ;;  %v134_v39 = vld [vmem:[#allocation2 + $0xf0] sm:$0xff]  ;;  %v135_v40 = vld [vmem:[#allocation2 + $0xf8] sm:$0xff] }
  0x74   :  { %v8087_v43 = vld [vmem:[%s9039_s4] ss:$0 sm:$0xff] }
  0x75   :  { %7470 = vmatpush3.bf16.msra.mxu1 %v7467_v41  ;;  %v8082_v41 = vld [vmem:[%s9041_s6] ss:$0 sm:$0xff] }
  0x76   :  { %7438 = vmatpush3.bf16.msra.mxu0 %v7435_v42  ;;  %7472 = vmatprep.subr.bf16.mxu1 %v7471_v47 }
  0x77   :  { %7440 = vmatprep.subr.bf16.mxu0 %v7439_v48 }
  0x79   :  { %7474 = vmatpush3.bf16.msra.mxu1 %v7471_v47 }
  0x7a   :  { %7442 = vmatpush3.bf16.msra.mxu0 %v7439_v48  ;;  %7539 = vmatprep.subr.bf16.mxu1 %v7475_v51 }
  0x7b   :  { %7476 = vmatprep.subr.bf16.mxu0 %v7475_v51 }
  0x7c   :  { %6884 = vmatmul.mubr.f32.vlgmr.msra.gmra.mrb[0].mxu1 %v7992_v54 }
  0x7d   :  { %6804 = vmatmul.mubr.f32.vlgmr.msra.gmra.mrb[0].mxu0 %v7992_v54  ;;  %6886 = vmatprep.mubr.f32.mxu1 %v7994_v55 }
  0x7e   :  { %6806 = vmatprep.mubr.f32.mxu0 %v7994_v55  ;;  %7547 = vmatpush3.bf16.msra.mxu1 %v7475_v51 }
  0x7f   :  { %7540 = vmatprep.subr.bf16.mxu1 %v7479_v56  ;;  %7478 = vmatpush3.bf16.msra.mxu0 %v7475_v51 }
  0x80   :  { %6887 = vmatmul.mubr.f32.gmra.mrb[2].mxu1 %v7999_v59  ;;  %7480 = vmatprep.subr.bf16.mxu0 %v7479_v56 }
  0x81   :  { %6807 = vmatmul.mubr.f32.gmra.mrb[2].mxu0 %v7999_v59  ;;  %6889 = vmatprep.mubr.f32.mxu1 %v8002_v60 }
  0x82   :  { %6809 = vmatprep.mubr.f32.mxu0 %v8002_v60  ;;  %7548 = vmatpush3.bf16.msra.mxu1 %v7479_v56 }
  0x83   :  { %7541 = vmatprep.subr.bf16.mxu1 %v7483_v61  ;;  %7482 = vmatpush3.bf16.msra.mxu0 %v7479_v56 }
  0x84   :  { %6890 = vmatmul.mubr.f32.gmra.mrb[4].mxu1 %v8007_v0  ;;  %7484 = vmatprep.subr.bf16.mxu0 %v7483_v61 }
  0x85   :  { %6810 = vmatmul.mubr.f32.gmra.mrb[4].mxu0 %v8007_v0  ;;  %6892 = vmatprep.mubr.f32.mxu1 %v8010_v1 }
  0x86   :  { %6812 = vmatprep.mubr.f32.mxu0 %v8010_v1  ;;  %7549 = vmatpush3.bf16.msra.mxu1 %v7483_v61 }
  0x87   :  { %7542 = vmatprep.subr.bf16.mxu1 %v7487_v2  ;;  %7486 = vmatpush3.bf16.msra.mxu0 %v7483_v61 }
  0x88   :  { %6893 = vmatmul.mubr.f32.gmra.mrb[6].mxu1 %v8015_v5  ;;  %7488 = vmatprep.subr.bf16.mxu0 %v7487_v2 }
  0x89   :  { %6813 = vmatmul.mubr.f32.gmra.mrb[6].mxu0 %v8015_v5  ;;  %6895 = vmatprep.mubr.f32.mxu1 %v8018_v6 }
  0x8a   :  { %6815 = vmatprep.mubr.f32.mxu0 %v8018_v6  ;;  %7550 = vmatpush3.bf16.msra.mxu1 %v7487_v2 }
  0x8b   :  { %7543 = vmatprep.subr.bf16.mxu1 %v7491_v7  ;;  %7490 = vmatpush3.bf16.msra.mxu0 %v7487_v2 }
  0x8c   :  { %6896 = vmatmul.mubr.f32.gmra.mrb[8].mxu1 %v8023_v10  ;;  %7492 = vmatprep.subr.bf16.mxu0 %v7491_v7 }
  0x8d   :  { %6816 = vmatmul.mubr.f32.gmra.mrb[8].mxu0 %v8023_v10  ;;  %6898 = vmatprep.mubr.f32.mxu1 %v8026_v11 }
  0x8e   :  { %6818 = vmatprep.mubr.f32.mxu0 %v8026_v11  ;;  %7551 = vmatpush3.bf16.msra.mxu1 %v7491_v7 }
  0x8f   :  { %7544 = vmatprep.subr.bf16.mxu1 %v7495_v12  ;;  %7494 = vmatpush3.bf16.msra.mxu0 %v7491_v7 }
  0x90   :  { %6899 = vmatmul.mubr.f32.gmra.mrb[10].mxu1 %v8031_v15  ;;  %7496 = vmatprep.subr.bf16.mxu0 %v7495_v12 }
  0x91   :  { %6819 = vmatmul.mubr.f32.gmra.mrb[10].mxu0 %v8031_v15  ;;  %6901 = vmatprep.mubr.f32.mxu1 %v8034_v16 }
  0x92   :  { %6821 = vmatprep.mubr.f32.mxu0 %v8034_v16  ;;  %7552 = vmatpush3.bf16.msra.mxu1 %v7495_v12 }
  0x93   :  { %7545 = vmatprep.subr.bf16.mxu1 %v7499_v17  ;;  %7498 = vmatpush3.bf16.msra.mxu0 %v7495_v12 }
  0x94   :  { %6902 = vmatmul.mubr.f32.gmra.mrb[12].mxu1 %v8039_v20  ;;  %7500 = vmatprep.subr.bf16.mxu0 %v7499_v17 }
  0x95   :  { %6822 = vmatmul.mubr.f32.gmra.mrb[12].mxu0 %v8039_v20  ;;  %6904 = vmatprep.mubr.f32.mxu1 %v8042_v21 }
  0x96   :  { %6824 = vmatprep.mubr.f32.mxu0 %v8042_v21  ;;  %7553 = vmatpush3.bf16.msra.mxu1 %v7499_v17 }
  0x97   :  { %7546 = vmatprep.subr.bf16.mxu1 %v7503_v22  ;;  %7502 = vmatpush3.bf16.msra.mxu0 %v7499_v17 }
  0x98   :  { %6905 = vmatmul.mubr.f32.gmra.mrb[14].mxu1 %v8047_v23  ;;  %7504 = vmatprep.subr.bf16.mxu0 %v7503_v22 }
  0x99   :  { %6825 = vmatmul.mubr.f32.gmra.mrb[14].mxu0 %v8047_v23  ;;  %6907 = vmatprep.mubr.f32.mxu1 %v8050_v24 }
  0x9a   :  { %6827 = vmatprep.mubr.f32.mxu0 %v8050_v24  ;;  %7554 = vmatpush3.bf16.msra.mxu1 %v7503_v22 }
  0x9b   :  { %7506 = vmatpush3.bf16.msra.mxu0 %v7503_v22 }
  0x9c   :  { %6908 = vmatmul.mubr.f32.gmra.mrb[16].mxu1 %v121_v25 }
  0x9d   :  { %6828 = vmatmul.mubr.f32.gmra.mrb[16].mxu0 %v121_v25  ;;  %6910 = vmatprep.mubr.f32.mxu1 %v122_v27 }
  0x9e   :  { %6830 = vmatprep.mubr.f32.mxu0 %v122_v27 }
  0xa0   :  { %6911 = vmatmul.mubr.f32.gmra.mrb[18].mxu1 %v123_v28 }
  0xa1   :  { %6831 = vmatmul.mubr.f32.gmra.mrb[18].mxu0 %v123_v28  ;;  %6913 = vmatprep.mubr.f32.mxu1 %v124_v29 }
  0xa2   :  { %6833 = vmatprep.mubr.f32.mxu0 %v124_v29 }
  0xa4   :  { %6914 = vmatmul.mubr.f32.gmra.mrb[20].mxu1 %v125_v30 }
  0xa5   :  { %6834 = vmatmul.mubr.f32.gmra.mrb[20].mxu0 %v125_v30  ;;  %6916 = vmatprep.mubr.f32.mxu1 %v126_v31 }
  0xa6   :  { %6836 = vmatprep.mubr.f32.mxu0 %v126_v31 }
  0xa8   :  { %6917 = vmatmul.mubr.f32.gmra.mrb[22].mxu1 %v127_v32 }
  0xa9   :  { %6837 = vmatmul.mubr.f32.gmra.mrb[22].mxu0 %v127_v32  ;;  %6919 = vmatprep.mubr.f32.mxu1 %v128_v33 }
  0xaa   :  { %6839 = vmatprep.mubr.f32.mxu0 %v128_v33 }
  0xac   :  { %6920 = vmatmul.mubr.f32.gmra.mrb[24].mxu1 %v129_v34 }
  0xad   :  { %6840 = vmatmul.mubr.f32.gmra.mrb[24].mxu0 %v129_v34  ;;  %6922 = vmatprep.mubr.f32.mxu1 %v130_v35 }
  0xae   :  { %6842 = vmatprep.mubr.f32.mxu0 %v130_v35 }
  0xb0   :  { %6923 = vmatmul.mubr.f32.gmra.mrb[26].mxu1 %v131_v36 }
  0xb1   :  { %6843 = vmatmul.mubr.f32.gmra.mrb[26].mxu0 %v131_v36  ;;  %6925 = vmatprep.mubr.f32.mxu1 %v132_v37 }
  0xb2   :  { %6845 = vmatprep.mubr.f32.mxu0 %v132_v37 }
  0xb4   :  { %6926 = vmatmul.mubr.f32.gmra.mrb[28].mxu1 %v133_v38 }
  0xb5   :  { %6846 = vmatmul.mubr.f32.gmra.mrb[28].mxu0 %v133_v38  ;;  %6928 = vmatprep.mubr.f32.mxu1 %v134_v39 }
  0xb6   :  { %6848 = vmatprep.mubr.f32.mxu0 %v134_v39 }
  0xb8   :  { %6929 = vmatmul.mubr.f32.gmra.mrb[30].mxu1 %v135_v40 }
  0xb9   :  { %6849 = vmatmul.mubr.f32.gmra.mrb[30].mxu0 %v135_v40  ;;  %6978 = vmatprep.mubr.f32.mxu1 %v8026_v11 }
  0xba   :  { %6963 = vmatprep.mubr.f32.mxu0 %v7988_v26  ;;  %v9046_v26 = vmov 0.0  }
  0xbb   :  { %7011 = vmatprep.subr.mxu1 %v9046_v26  ;;  %7091 = vmatprep.subr.mxu0 %v9046_v26 }
  0xbc   :  { %6979 = vmatmul.mubr.f32.vlgmr.msra.gmra.mrb[32].mxu1 %v8031_v15 }
  0xbd   :  { %6981 = vmatprep.mubr.f32.mxu1 %v8034_v16  ;;  %6964 = vmatmul.mubr.f32.vlgmr.msra.gmra.mrb[32].mxu0 %v7992_v54 }
  0xbe   :  { %6966 = vmatprep.mubr.f32.mxu0 %v7994_v55 }
  0xc0   :  { %6982 = vmatmul.mubr.f32.gmra.mrb[34].mxu1 %v8039_v20 }
  0xc1   :  { %6984 = vmatprep.mubr.f32.mxu1 %v8042_v21  ;;  %6967 = vmatmul.mubr.f32.gmra.mrb[34].mxu0 %v7999_v59 }
  0xc2   :  { %6969 = vmatprep.mubr.f32.mxu0 %v8002_v60 }
  0xc4   :  { %6985 = vmatmul.mubr.f32.gmra.mrb[36].mxu1 %v8047_v23 }
  0xc5   :  { %6987 = vmatprep.mubr.f32.mxu1 %v8050_v24  ;;  %6970 = vmatmul.mubr.f32.gmra.mrb[36].mxu0 %v8007_v0 }
  0xc6   :  { %6972 = vmatprep.mubr.f32.mxu0 %v8010_v1 }
  0xc8   :  { %6988 = vmatmul.mubr.f32.gmra.mrb[38].mxu1 %v121_v25 }
  0xc9   :  { %6990 = vmatprep.mubr.f32.mxu1 %v122_v27  ;;  %6973 = vmatmul.mubr.f32.gmra.mrb[38].mxu0 %v8015_v5 }
  0xca   :  { %6975 = vmatprep.mubr.f32.mxu0 %v8018_v6 }
  0xcc   :  { %6991 = vmatmul.mubr.f32.gmra.mrb[40].mxu1 %v123_v28 }
  0xcd   :  { %6993 = vmatprep.mubr.f32.mxu1 %v124_v29  ;;  %6976 = vmatmul.mubr.f32.gmra.mrb[40].mxu0 %v8023_v10 }
  0xce   :  { %7093 = vmatprep.mubr.msk.f32.mxu0 %vm7842_vm0, %v9046_v26 }
  0xd0   :  { %6994 = vmatmul.mubr.f32.gmra.mrb[42].mxu1 %v125_v30 }
  0xd1   :  { %6996 = vmatprep.mubr.f32.mxu1 %v126_v31 }
  0xd4   :  { %6997 = vmatmul.mubr.f32.gmra.mrb[44].mxu1 %v127_v32 }
  0xd5   :  { %6999 = vmatprep.mubr.f32.mxu1 %v128_v33 }
  0xd8   :  { %7000 = vmatmul.mubr.f32.gmra.mrb[46].mxu1 %v129_v34 }
  0xd9   :  { %7002 = vmatprep.mubr.f32.mxu1 %v130_v35 }
  0xdc   :  { %7003 = vmatmul.mubr.f32.gmra.mrb[48].mxu1 %v131_v36 }
  0xdd   :  { %7005 = vmatprep.mubr.f32.mxu1 %v132_v37 }
  0xe0   :  { %7006 = vmatmul.mubr.f32.gmra.mrb[50].mxu1 %v133_v38 }
  0xe1   :  { %7008 = vmatprep.mubr.f32.mxu1 %v134_v39 }
  0xe4   :  { %7009 = vmatmul.mubr.f32.gmra.mrb[52].mxu1 %v135_v40 }
  0xe5   :  { %7013 = vmatprep.mubr.msk.f32.mxu1 %vm7842_vm0, %v9046_v26 }
 0x14f   :  { %v6885_v42 = vpop.f32.mrb[0].mxu1 }
 0x150   :  { %v473_v44 = vpop.f32.mrb[1].mxu1  ;;  %v6805_v45 = vpop.f32.mrb[0].mxu0  ;;  %v479_v52 = vadd.f32 %v6885_v42, %v8082_v41 }
 0x151   :  { %v474_v46 = vadd.f32 %v8082_v41, %v473_v44  ;;  %v225_v47 = vpop.f32.mrb[1].mxu0  ;;  %v231_v56 = vadd.f32 %v6805_v45, %v8087_v43 }
 0x152   :  { %v226_v48 = vadd.f32 %v8087_v43, %v225_v47 }
 0x153   :  { %7012 = vmatpush3.xpose.msra.mxu1 %v474_v46  ;;  %v6888_v49 = vpop.f32.mrb[2].mxu1 }
 0x154   :  { %7016 = vmatprep.subr.mxu1 %v9046_v26  ;;  %v483_v50 = vpop.f32.mrb[3].mxu1  ;;  %v6808_v51 = vpop.f32.mrb[2].mxu0  ;;  %v489_v0 = vadd.f32 %v6888_v49, %v8082_v41 }
 0x155   :  { %v235_v53 = vpop.f32.mrb[3].mxu0  ;;  %v484_v54 = vadd.f32 %v8082_v41, %v483_v50  ;;  %v241_v4 = vadd.f32 %v6808_v51, %v8087_v43 }
 0x156   :  { %7014 = vmatmul.mubr.f32.vlgmr.msra.gmra.mrb[54].mxu1 %v226_v48  ;;  %v236_v60 = vadd.f32 %v8087_v43, %v235_v53 }
 0x157   :  { %7017 = vmatpush3.xpose.msra.mxu1 %v479_v52  ;;  %7018 = vmatprep.mubr.msk.f32.mxu1 %vm7842_vm0, %v9046_v26  ;;  %v6891_v55 = vpop.f32.mrb[4].mxu1 }
 0x158   :  { %7021 = vmatprep.subr.mxu1 %v9046_v26  ;;  %v493_v57 = vpop.f32.mrb[5].mxu1  ;;  %v6811_v58 = vpop.f32.mrb[4].mxu0  ;;  %v499_v12 = vadd.f32 %v6891_v55, %v8082_v41 }
 0x159   :  { %v245_v59 = vpop.f32.mrb[5].mxu0  ;;  %v494_v2 = vadd.f32 %v8082_v41, %v493_v57  ;;  %v251_v16 = vadd.f32 %v6811_v58, %v8087_v43 }
 0x15a   :  { %7019 = vmatmul.mubr.f32.vlgmr.msra.gmra.mrb[56].mxu1 %v231_v56  ;;  %v246_v8 = vadd.f32 %v8087_v43, %v245_v59 }
 0x15b   :  { %7022 = vmatpush3.xpose.msra.mxu1 %v484_v54  ;;  %7023 = vmatprep.mubr.msk.f32.mxu1 %vm7842_vm0, %v9046_v26  ;;  %v6894_v61 = vpop.f32.mrb[6].mxu1 }
 0x15c   :  { %7026 = vmatprep.subr.mxu1 %v9046_v26  ;;  %v503_v62 = vpop.f32.mrb[7].mxu1  ;;  %v6814_v63 = vpop.f32.mrb[6].mxu0  ;;  %v509_v24 = vadd.f32 %v6894_v61, %v8082_v41 }
 0x15d   :  { %v255_v1 = vpop.f32.mrb[7].mxu0  ;;  %v504_v14 = vadd.f32 %v8082_v41, %v503_v62  ;;  %v261_v29 = vadd.f32 %v6814_v63, %v8087_v43 }
 0x15e   :  { %7024 = vmatmul.mubr.f32.vlgmr.msra.gmra.mrb[58].mxu1 %v236_v60  ;;  %v256_v20 = vadd.f32 %v8087_v43, %v255_v1 }
 0x15f   :  { %7027 = vmatpush3.xpose.msra.mxu1 %v489_v0  ;;  %7028 = vmatprep.mubr.msk.f32.mxu1 %vm7842_vm0, %v9046_v26  ;;  %v6897_v3 = vpop.f32.mrb[8].mxu1 }
 0x160   :  { %7031 = vmatprep.subr.mxu1 %v9046_v26  ;;  %v513_v5 = vpop.f32.mrb[9].mxu1  ;;  %v8108_v6 = vpop.f32.mrb[8].mxu0  ;;  %v519_v44 = vadd.f32 %v6897_v3, %v8082_v41 }
 0x161   :  { %v265_v7 = vpop.f32.mrb[9].mxu0  ;;  %v514_v27 = vadd.f32 %v8082_v41, %v513_v5  ;;  %v271_v50 = vadd.f32 %v8108_v6, %v8087_v43 }
 0x162   :  { %7029 = vmatmul.mubr.f32.vlgmr.msra.gmra.mrb[60].mxu1 %v241_v4  ;;  %v266_v36 = vadd.f32 %v8087_v43, %v265_v7 }
 0x163   :  { %7032 = vmatpush3.xpose.msra.mxu1 %v494_v2  ;;  %7033 = vmatprep.mubr.msk.f32.mxu1 %vm7842_vm0, %v9046_v26  ;;  %v8113_v9 = vpop.f32.mrb[10].mxu1 }
 0x164   :  { %7036 = vmatprep.subr.mxu1 %v9046_v26  ;;  %v523_v10 = vpop.f32.mrb[11].mxu1  ;;  %v8116_v11 = vpop.f32.mrb[10].mxu0  ;;  %v529_v0 = vadd.f32 %v8113_v9, %v8082_v41 }
 0x165   :  { %v8119_v13 = vpop.f32.mrb[11].mxu0  ;;  %v524_v48 = vadd.f32 %v8082_v41, %v523_v10  ;;  %v281_v6 = vadd.f32 %v8116_v11, %v8087_v43 }
 0x166   :  { %7034 = vmatmul.mubr.f32.vlgmr.msra.gmra.mrb[62].mxu1 %v246_v8  ;;  %v276_v58 = vadd.f32 %v8087_v43, %v8119_v13 }
 0x167   :  { %7037 = vmatpush3.xpose.msra.mxu1 %v499_v12  ;;  %7038 = vmatprep.mubr.msk.f32.mxu1 %vm7842_vm0, %v9046_v26  ;;  %v8124_v15 = vpop.f32.mrb[12].mxu1 }
 0x168   :  { %7041 = vmatprep.subr.mxu1 %v9046_v26  ;;  %v8128_v17 = vpop.f32.mrb[13].mxu1  ;;  %v8130_v18 = vpop.f32.mrb[12].mxu0 }
 0x169   :  { %v8132_v19 = vpop.f32.mrb[13].mxu0  ;;  %v534_v4 = vadd.f32 %v8082_v41, %v8128_v17 }
 0x16a   :  { %7039 = vmatmul.mubr.f32.vlgmr.msra.gmra.mrb[64].mxu1 %v251_v16 }
 0x16b   :  { %7042 = vmatpush3.xpose.msra.mxu1 %v504_v14  ;;  %7043 = vmatprep.mubr.msk.f32.mxu1 %vm7842_vm0, %v9046_v26  ;;  %v8137_v21 = vpop.f32.mrb[14].mxu1  ;;  %v286_v14 = vadd.f32 %v8087_v43, %v8132_v19  ;;  %v539_v19 = vadd.f32 %v8124_v15, %v8082_v41 }
 0x16c   :  { %7046 = vmatprep.subr.mxu1 %v9046_v26  ;;  %v8140_v22 = vpop.f32.mrb[15].mxu1  ;;  %v8142_v23 = vpop.f32.mrb[14].mxu0 }
 0x16d   :  { %v8145_v25 = vpop.f32.mrb[15].mxu0 }
 0x16e   :  { %7044 = vmatmul.mubr.f32.vlgmr.msra.gmra.mrb[66].mxu1 %v256_v20 }
 0x16f   :  { %7047 = vmatpush3.xpose.msra.mxu1 %v509_v24  ;;  %7048 = vmatprep.mubr.msk.f32.mxu1 %vm7842_vm0, %v9046_v26  ;;  %v6909_v28 = vpop.f32.mrb[16].mxu1 }
 0x170   :  { %7051 = vmatprep.subr.mxu1 %v9046_v26  ;;  %v8153_v30 = vadd.f32 %v6909_v28, %v8082_v41  ;;  %v553_v31 = vpop.f32.mrb[17].mxu1  ;;  %v6829_v32 = vpop.f32.mrb[16].mxu0 }
 0x171   :  { %v554_v33 = vadd.f32 %v8082_v41, %v553_v31  ;;  %v8157_v34 = vadd.f32 %v6829_v32, %v8087_v43  ;;  %v305_v35 = vpop.f32.mrb[17].mxu0  ;;  %v544_v32 = vadd.f32 %v8082_v41, %v8140_v22 }
 0x172   :  { %7049 = vmatmul.mubr.f32.vlgmr.msra.gmra.mrb[68].mxu1 %v261_v29  ;;  %v306_v38 = vadd.f32 %v8087_v43, %v305_v35 }
 0x173   :  { %7052 = vmatpush3.xpose.msra.mxu1 %v514_v27  ;;  %7053 = vmatprep.mubr.msk.f32.mxu1 %vm7842_vm0, %v9046_v26  ;;  %v6912_v37 = vpop.f32.mrb[18].mxu1 }
 0x174   :  { %7056 = vmatprep.subr.mxu1 %v9046_v26  ;;  %v8165_v39 = vadd.f32 %v6912_v37, %v8082_v41  ;;  %7092 = vmatpush3.xpose.msra.mxu0 %v554_v33  ;;  %v563_v40 = vpop.f32.mrb[19].mxu1  ;;  %v6832_v42 = vpop.f32.mrb[18].mxu0  ;;  %v291_v33 = vadd.f32 %v8130_v18, %v8087_v43 }
 0x175   :  { %v564_v45 = vadd.f32 %v8082_v41, %v563_v40  ;;  %v8170_v46 = vadd.f32 %v6832_v42, %v8087_v43  ;;  %7101 = vmatprep.subr.mxu0 %v9046_v26  ;;  %v315_v47 = vpop.f32.mrb[19].mxu0  ;;  %v296_v42 = vadd.f32 %v8087_v43, %v8145_v25  ;;  %v549_v25 = vadd.f32 %v8137_v21, %v8082_v41 }
 0x176   :  { %7054 = vmatmul.mubr.f32.vlgmr.msra.gmra.mrb[70].mxu1 %v266_v36  ;;  %v316_v51 = vadd.f32 %v8087_v43, %v315_v47  ;;  %v301_v21 = vadd.f32 %v8142_v23, %v8087_v43 }
 0x177   :  { %7057 = vmatpush3.xpose.msra.mxu1 %v519_v44  ;;  %7058 = vmatprep.mubr.msk.f32.mxu1 %vm7842_vm0, %v9046_v26  ;;  %v6915_v49 = vpop.f32.mrb[20].mxu1 }
 0x178   :  { %7061 = vmatprep.subr.mxu1 %v9046_v26  ;;  %7094 = vmatmul.mubr.f32.vlgmr.msra.gmra.mrb[42].mxu0 %v306_v38  ;;  %v8181_v52 = vadd.f32 %v6915_v49, %v8082_v41  ;;  %v573_v53 = vpop.f32.mrb[21].mxu1  ;;  %v6835_v54 = vpop.f32.mrb[20].mxu0 }
 0x179   :  { %7102 = vmatpush3.xpose.msra.mxu0 %v564_v45  ;;  %v574_v55 = vadd.f32 %v8082_v41, %v573_v53  ;;  %7103 = vmatprep.mubr.msk.f32.mxu0 %vm7842_vm0, %v9046_v26  ;;  %v8187_v56 = vadd.f32 %v6835_v54, %v8087_v43  ;;  %v325_v57 = vpop.f32.mrb[21].mxu0 }
 0x17a   :  { %7059 = vmatmul.mubr.f32.vlgmr.msra.gmra.mrb[72].mxu1 %v271_v50  ;;  %7111 = vmatprep.subr.mxu0 %v9046_v26  ;;  %v326_v60 = vadd.f32 %v8087_v43, %v325_v57 }
 0x17b   :  { %7062 = vmatpush3.xpose.msra.mxu1 %v524_v48  ;;  %7063 = vmatprep.mubr.msk.f32.mxu1 %vm7842_vm0, %v9046_v26  ;;  %v6918_v59 = vpop.f32.mrb[22].mxu1 }
 0x17c   :  { %7066 = vmatprep.subr.mxu1 %v9046_v26  ;;  %7104 = vmatmul.mubr.f32.vlgmr.msra.gmra.mrb[44].mxu0 %v316_v51  ;;  %v8197_v61 = vadd.f32 %v6918_v59, %v8082_v41  ;;  %v583_v62 = vpop.f32.mrb[23].mxu1  ;;  %v6838_v63 = vpop.f32.mrb[22].mxu0 }
 0x17d   :  { %7112 = vmatpush3.xpose.msra.mxu0 %v574_v55  ;;  %v584_v1 = vadd.f32 %v8082_v41, %v583_v62  ;;  %7113 = vmatprep.mubr.msk.f32.mxu0 %vm7842_vm0, %v9046_v26  ;;  %v8205_v2 = vadd.f32 %v6838_v63, %v8087_v43  ;;  %v335_v3 = vpop.f32.mrb[23].mxu0 }
 0x17e   :  { %7064 = vmatmul.mubr.f32.vlgmr.msra.gmra.mrb[74].mxu1 %v276_v58  ;;  %7121 = vmatprep.subr.mxu0 %v9046_v26  ;;  %v336_v7 = vadd.f32 %v8087_v43, %v335_v3 }
 0x17f   :  { %7067 = vmatpush3.xpose.msra.mxu1 %v529_v0  ;;  %7068 = vmatprep.mubr.msk.f32.mxu1 %vm7842_vm0, %v9046_v26  ;;  %v6921_v5 = vpop.f32.mrb[24].mxu1 }
 0x180   :  { %7071 = vmatprep.subr.mxu1 %v9046_v26  ;;  %7114 = vmatmul.mubr.f32.vlgmr.msra.gmra.mrb[46].mxu0 %v326_v60  ;;  %v8217_v8 = vadd.f32 %v6921_v5, %v8082_v41  ;;  %v593_v9 = vpop.f32.mrb[25].mxu1  ;;  %v6841_v10 = vpop.f32.mrb[24].mxu0 }
 0x181   :  { %7122 = vmatpush3.xpose.msra.mxu0 %v584_v1  ;;  %v594_v12 = vadd.f32 %v8082_v41, %v593_v9  ;;  %7123 = vmatprep.mubr.msk.f32.mxu0 %vm7842_vm0, %v9046_v26  ;;  %v8223_v13 = vadd.f32 %v6841_v10, %v8087_v43  ;;  %v345_v11 = vpop.f32.mrb[25].mxu0 }
 0x182   :  { %7069 = vmatmul.mubr.f32.vlgmr.msra.gmra.mrb[76].mxu1 %v281_v6  ;;  %7131 = vmatprep.subr.mxu0 %v9046_v26  ;;  %v346_v17 = vadd.f32 %v8087_v43, %v345_v11  ;;  %v8380_v6 = vld [vmem:[%s9037_s2] ss:$0 sm:$0xff] }
 0x183   :  { %7072 = vmatpush3.xpose.msra.mxu1 %v534_v4  ;;  %7073 = vmatprep.mubr.msk.f32.mxu1 %vm7842_vm0, %v9046_v26  ;;  %v6924_v16 = vpop.f32.mrb[26].mxu1 }
 0x184   :  { %7076 = vmatprep.subr.mxu1 %v9046_v26  ;;  %7124 = vmatmul.mubr.f32.vlgmr.msra.gmra.mrb[48].mxu0 %v336_v7  ;;  %v8233_v20 = vadd.f32 %v6924_v16, %v8082_v41  ;;  %v603_v24 = vpop.f32.mrb[27].mxu1  ;;  %v6844_v27 = vpop.f32.mrb[26].mxu0 }
 0x185   :  { %7132 = vmatpush3.xpose.msra.mxu0 %v594_v12  ;;  %v604_v28 = vadd.f32 %v8082_v41, %v603_v24  ;;  %7133 = vmatprep.mubr.msk.f32.mxu0 %vm7842_vm0, %v9046_v26  ;;  %v8241_v29 = vadd.f32 %v6844_v27, %v8087_v43  ;;  %v355_v31 = vpop.f32.mrb[27].mxu0 }
 0x186   :  { %7074 = vmatmul.mubr.f32.vlgmr.msra.gmra.mrb[78].mxu1 %v286_v14  ;;  %7141 = vmatprep.subr.mxu0 %v9046_v26  ;;  %v356_v35 = vadd.f32 %v8087_v43, %v355_v31 }
 0x187   :  { %7077 = vmatpush3.xpose.msra.mxu1 %v539_v19  ;;  %7078 = vmatprep.mubr.msk.f32.mxu1 %vm7842_vm0, %v9046_v26  ;;  %v6927_v15 = vpop.f32.mrb[28].mxu1 }
 0x188   :  { %7081 = vmatprep.subr.mxu1 %v9046_v26  ;;  %7134 = vmatmul.mubr.f32.vlgmr.msra.gmra.mrb[50].mxu0 %v346_v17  ;;  %v8253_v36 = vadd.f32 %v6927_v15, %v8082_v41  ;;  %v613_v37 = vpop.f32.mrb[29].mxu1  ;;  %v6847_v38 = vpop.f32.mrb[28].mxu0 }
 0x189   :  { %7142 = vmatpush3.xpose.msra.mxu0 %v604_v28  ;;  %v614_v22 = vadd.f32 %v8082_v41, %v613_v37  ;;  %7143 = vmatprep.mubr.msk.f32.mxu0 %vm7842_vm0, %v9046_v26  ;;  %v8259_v40 = vadd.f32 %v6847_v38, %v8087_v43  ;;  %v365_v18 = vpop.f32.mrb[29].mxu0 }
 0x18a   :  { %7079 = vmatmul.mubr.f32.vlgmr.msra.gmra.mrb[80].mxu1 %v291_v33  ;;  %7151 = vmatprep.subr.mxu0 %v9046_v26  ;;  %v366_v45 = vadd.f32 %v8087_v43, %v365_v18 }
 0x18b   :  { %7082 = vmatpush3.xpose.msra.mxu1 %v544_v32  ;;  %7083 = vmatprep.mubr.msk.f32.mxu1 %vm7842_vm0, %v9046_v26  ;;  %v6930_v44 = vpop.f32.mrb[30].mxu1 }
 0x18c   :  { %7086 = vmatprep.subr.mxu1 %v9046_v26  ;;  %7144 = vmatmul.mubr.f32.vlgmr.msra.gmra.mrb[52].mxu0 %v356_v35  ;;  %v8269_v47 = vadd.f32 %v6930_v44, %v8082_v41  ;;  %v623_v48 = vpop.f32.mrb[31].mxu1  ;;  %v6850_v49 = vpop.f32.mrb[30].mxu0 }
 0x18d   :  { %7152 = vmatpush3.xpose.msra.mxu0 %v614_v22  ;;  %v624_v50 = vadd.f32 %v8082_v41, %v623_v48  ;;  %7153 = vmatprep.mubr.msk.f32.mxu0 %vm7842_vm0, %v9046_v26  ;;  %v8277_v51 = vadd.f32 %v6850_v49, %v8087_v43  ;;  %v375_v53 = vpop.f32.mrb[31].mxu0 }
 0x18e   :  { %7084 = vmatmul.mubr.f32.vlgmr.msra.gmra.mrb[82].mxu1 %v296_v42  ;;  %7161 = vmatprep.subr.mxu0 %v9046_v26  ;;  %v376_v41 = vadd.f32 %v8087_v43, %v375_v53 }
 0x18f   :  { %7087 = vmatpush3.xpose.msra.mxu1 %v549_v25  ;;  %7088 = vmatprep.mubr.msk.f32.mxu1 %vm7842_vm0, %v9046_v26  ;;  %v8282_v54 = vpop.f32.mrb[32].mxu1 }
 0x190   :  { %7096 = vmatprep.subr.mxu1 %v9046_v26  ;;  %7154 = vmatmul.mubr.f32.vlgmr.msra.gmra.mrb[54].mxu0 %v366_v45  ;;  %v8288_v55 = vpop.f32.mrb[33].mxu1  ;;  %v6965_v5 = vpop.f32.mrb[32].mxu0 }
 0x191   :  { %7162 = vmatpush3.xpose.msra.mxu0 %v624_v50  ;;  %7163 = vmatprep.mubr.msk.f32.mxu0 %vm7842_vm0, %v9046_v26  ;;  %v721_v7 = vpop.f32.mrb[33].mxu0 }
 0x192   :  { %7089 = vmatmul.mubr.f32.vlgmr.msra.gmra.mrb[84].mxu1 %v301_v21  ;;  %7171 = vmatprep.subr.mxu0 %v9046_v26  ;;  %v722_v9 = vadd.f32 %v8380_v6, %v721_v7 }
 0x193   :  { %7097 = vmatpush3.xpose.msra.mxu1 %v8153_v30  ;;  %7098 = vmatprep.mubr.msk.f32.mxu1 %vm7842_vm0, %v9046_v26  ;;  %v8296_v23 = vpop.f32.mrb[34].mxu1 }
 0x194   :  { %7106 = vmatprep.subr.mxu1 %v9046_v26  ;;  %7164 = vmatmul.mubr.f32.vlgmr.msra.gmra.mrb[56].mxu0 %v376_v41  ;;  %v8299_v43 = vpop.f32.mrb[35].mxu1  ;;  %v8384_v10 = vpop.f32.mrb[34].mxu0 }
 0x195   :  { %7173 = vmatprep.mubr.msk.f32.mxu0 %vm7842_vm0, %v9046_v26  ;;  %7172 = vmatpush3.msra.mxu0 %v722_v9  ;;  %v8386_v12 = vpop.f32.mrb[35].mxu0 }
 0x196   :  { %7099 = vmatmul.mubr.f32.vlgmr.msra.gmra.mrb[86].mxu1 %v8157_v34  ;;  %7181 = vmatprep.subr.mxu0 %v9046_v26 }
 0x197   :  { %7107 = vmatpush3.xpose.msra.mxu1 %v8165_v39  ;;  %7108 = vmatprep.mubr.msk.f32.mxu1 %vm7842_vm0, %v9046_v26  ;;  %v8307_v30 = vpop.f32.mrb[36].mxu1 }
 0x198   :  { %7116 = vmatprep.subr.mxu1 %v9046_v26  ;;  %v8310_v57 = vpop.f32.mrb[37].mxu1 }
 0x19a   :  { %7109 = vmatmul.mubr.f32.vlgmr.msra.gmra.mrb[88].mxu1 %v8170_v46 }
 0x19b   :  { %7117 = vmatpush3.xpose.msra.mxu1 %v8181_v52  ;;  %7118 = vmatprep.mubr.msk.f32.mxu1 %vm7842_vm0, %v9046_v26  ;;  %v8316_v58 = vpop.f32.mrb[38].mxu1 }
 0x19c   :  { %7126 = vmatprep.subr.mxu1 %v9046_v26  ;;  %v8319_v34 = vpop.f32.mrb[39].mxu1 }
 0x19e   :  { %7119 = vmatmul.mubr.f32.vlgmr.msra.gmra.mrb[90].mxu1 %v8187_v56 }
 0x19f   :  { %7127 = vmatpush3.xpose.msra.mxu1 %v8197_v61  ;;  %7128 = vmatprep.mubr.msk.f32.mxu1 %vm7842_vm0, %v9046_v26  ;;  %v8325_v39 = vpop.f32.mrb[40].mxu1 }
 0x1a0   :  { %9048 = vst [vmem:[#allocation16_spill] sm:$0xff] %v8325_v39  ;;  %7136 = vmatprep.subr.mxu1 %v9046_v26  ;;  %v8328_v46 = vpop.f32.mrb[41].mxu1 }
 0x1a2   :  { %7129 = vmatmul.mubr.f32.vlgmr.msra.gmra.mrb[92].mxu1 %v8205_v2 }
 0x1a3   :  { %7137 = vmatpush3.xpose.msra.mxu1 %v8217_v8  ;;  %7138 = vmatprep.mubr.msk.f32.mxu1 %vm7842_vm0, %v9046_v26  ;;  %v8334_v52 = vpop.f32.mrb[42].mxu1  ;;  %v727_v8 = vadd.f32 %v6965_v5, %v8380_v6 }
 0x1a4   :  { %9049 = vst [vmem:[#allocation17_spill] sm:$0xff] %v8334_v52  ;;  %7146 = vmatprep.subr.mxu1 %v9046_v26  ;;  %v8337_v56 = vpop.f32.mrb[43].mxu1 }
 0x1a5   :  { %9050 = vst [vmem:[#allocation18_spill] sm:$0xff] %v8337_v56 }
 0x1a6   :  { %7139 = vmatmul.mubr.f32.vlgmr.msra.gmra.mrb[94].mxu1 %v8223_v13  ;;  %v8390_v13 = vpop.f32.mrb[36].mxu0 }
 0x1a7   :  { %7147 = vmatpush3.xpose.msra.mxu1 %v8233_v20  ;;  %7148 = vmatprep.mubr.msk.f32.mxu1 %vm7842_vm0, %v9046_v26  ;;  %v8343_v59 = vpop.f32.mrb[44].mxu1  ;;  %v8392_v11 = vpop.f32.mrb[37].mxu0 }
 0x1a8   :  { %9051 = vst [vmem:[#allocation19_spill] sm:$0xff] %v8343_v59  ;;  %7156 = vmatprep.subr.mxu1 %v9046_v26  ;;  %v8346_v60 = vpop.f32.mrb[45].mxu1  ;;  %v8394_v14 = vpop.f32.mrb[38].mxu0 }
 0x1a9   :  { %9052 = vst [vmem:[#allocation20_spill] sm:$0xff] %v8346_v60  ;;  %v8396_v16 = vpop.f32.mrb[39].mxu0 }
 0x1aa   :  { %7149 = vmatmul.mubr.f32.vlgmr.msra.gmra.mrb[96].mxu1 %v8241_v29  ;;  %v8398_v17 = vpop.f32.mrb[40].mxu0 }
 0x1ab   :  { %7157 = vmatpush3.xpose.msra.mxu1 %v8253_v36  ;;  %7158 = vmatprep.mubr.msk.f32.mxu1 %vm7842_vm0, %v9046_v26  ;;  %v8352_v61 = vpop.f32.mrb[46].mxu1  ;;  %v8400_v20 = vpop.f32.mrb[41].mxu0 }
 0x1ac   :  { %9053 = vst [vmem:[#allocation21_spill] sm:$0xff] %v8352_v61  ;;  %7166 = vmatprep.subr.mxu1 %v9046_v26  ;;  %v8355_v62 = vpop.f32.mrb[47].mxu1 }
 0x1ad   :  { %9054 = vst [vmem:[#allocation22_spill] sm:$0xff] %v8355_v62 }
 0x1ae   :  { %7159 = vmatmul.mubr.f32.vlgmr.msra.gmra.mrb[98].mxu1 %v8259_v40 }
 0x1af   :  { %7167 = vmatpush3.xpose.msra.mxu1 %v8269_v47  ;;  %7168 = vmatprep.mubr.msk.f32.mxu1 %vm7842_vm0, %v9046_v26  ;;  %v8361_v63 = vpop.f32.mrb[48].mxu1 }
 0x1b0   :  { %9055 = vst [vmem:[#allocation23_spill] sm:$0xff] %v8361_v63  ;;  %v8363_v0 = vpop.f32.mrb[49].mxu1  ;;  %7176 = vmatprep.subr.mxu1 %v9046_v26 }
 0x1b1   :  { %9056 = vst [vmem:[#allocation24_spill] sm:$0xff] %v8363_v0 }
 0x1b2   :  { %7169 = vmatmul.mubr.f32.vlgmr.msra.gmra.mrb[100].mxu1 %v8277_v51 }
 0x1b3   :  { %v8367_v1 = vpop.f32.mrb[50].mxu1  ;;  %7178 = vmatprep.mubr.msk.f32.mxu1 %vm7842_vm0, %v9046_v26  ;;  %7177 = vmatpush3.msra.mxu1 %v727_v8 }
 0x1b4   :  { %9057 = vst [vmem:[#allocation25_spill] sm:$0xff] %v8367_v1  ;;  %v8371_v2 = vpop.f32.mrb[51].mxu1  ;;  %7186 = vmatprep.subr.mxu1 %v9046_v26 }
 0x1b5   :  { %9058 = vst [vmem:[#allocation26_spill] sm:$0xff] %v8371_v2 }
 0x1b7   :  { %v8373_v3 = vpop.f32.mrb[52].mxu1 }
 0x1b8   :  { %9059 = vst [vmem:[#allocation27_spill] sm:$0xff] %v8373_v3  ;;  %v8375_v4 = vpop.f32.mrb[53].mxu1 }
 0x1b9   :  { %9060 = vst [vmem:[#allocation28_spill] sm:$0xff] %v8375_v4 }
 0x229   :  { %v8402_v24 = vpop.f32.mrb[54].mxu1 }
 0x22a   :  { %v3121_v27 = vsel %vm3120_vm1, %v8402_v24, -inf  ;;  %v7015_v19 = vpop.f32.mrb[55].mxu1 }
 0x22b   :  { %3122 = vmax.xlane.f32.xlu0 %v3121_v27 }
 0x22d   :  { %v8406_v28 = vpop.f32.mrb[56].mxu1 }
 0x22e   :  { %v3124_v29 = vsel %vm3120_vm1, %v8406_v28, -inf  ;;  %v7020_v31 = vpop.f32.mrb[57].mxu1 }
 0x22f   :  { %3125 = vmax.xlane.f32.xlu0 %v3124_v29 }
 0x231   :  { %v8410_v32 = vpop.f32.mrb[58].mxu1 }
 0x232   :  { %v3127_v15 = vsel %vm3120_vm1, %v8410_v32, -inf  ;;  %v7025_v33 = vpop.f32.mrb[59].mxu1 }
 0x233   :  { %3128 = vmax.xlane.f32.xlu1 %v3127_v15 }
 0x235   :  { %v8414_v35 = vpop.f32.mrb[60].mxu1 }
 0x236   :  { %v3130_v36 = vsel %vm3120_vm1, %v8414_v35, -inf  ;;  %v7030_v37 = vpop.f32.mrb[61].mxu1 }
 0x237   :  { %3131 = vmax.xlane.f32.xlu1 %v3130_v36 }
 0x239   :  { %v8418_v38 = vpop.f32.mrb[62].mxu1 }
 0x23a   :  { %v3133_v22 = vsel %vm3120_vm1, %v8418_v38, -inf  ;;  %v7035_v40 = vpop.f32.mrb[63].mxu1 }
 0x23b   :  { %3134 = vmax.xlane.f32.xlu0 %v3133_v22 }
 0x23d   :  { %v8422_v18 = vpop.f32.mrb[64].mxu1 }
 0x23e   :  { %v3136_v42 = vsel %vm3120_vm1, %v8422_v18, -inf  ;;  %v7040_v44 = vpop.f32.mrb[65].mxu1 }
 0x23f   :  { %3137 = vmax.xlane.f32.xlu1 %v3136_v42 }
 0x241   :  { %v8426_v45 = vpop.f32.mrb[66].mxu1 }
 0x242   :  { %v3139_v47 = vsel %vm3120_vm1, %v8426_v45, -inf  ;;  %v7045_v48 = vpop.f32.mrb[67].mxu1 }
 0x243   :  { %3140 = vmax.xlane.f32.xlu0 %v3139_v47 }
 0x245   :  { %v8430_v49 = vpop.f32.mrb[68].mxu1 }
 0x246   :  { %v3142_v25 = vsel %vm3120_vm1, %v8430_v49, -inf  ;;  %v7050_v50 = vpop.f32.mrb[69].mxu1 }
 0x247   :  { %3143 = vmax.xlane.f32.xlu1 %v3142_v25 }
 0x249   :  { %v8434_v51 = vpop.f32.mrb[70].mxu1 }
 0x24a   :  { %v3145_v53 = vsel %vm3120_vm1, %v8434_v51, -inf  ;;  %v7055_v21 = vpop.f32.mrb[71].mxu1 }
 0x24b   :  { %3146 = vmax.xlane.f32.xlu0 %v3145_v53  ;;  %v8438_v41 = vpop.f32.mrb[42].mxu0 }
 0x24c   :  { %v7095_v5 = vpop.f32.mrb[43].mxu0 }
 0x24d   :  { %v8440_v7 = vpop.f32.mrb[72].mxu1 }
 0x24e   :  { %v3148_v8 = vsel %vm3120_vm1, %v8440_v7, -inf  ;;  %v7060_v9 = vpop.f32.mrb[73].mxu1 }
 0x24f   :  { %3149 = vmax.xlane.f32.xlu1 %v3148_v8  ;;  %v8444_v27 = vpop.f32.mrb[44].mxu0 }
 0x250   :  { %v7105_v19 = vpop.f32.mrb[45].mxu0 }
 0x251   :  { %v8446_v29 = vpop.f32.mrb[74].mxu1 }
 0x252   :  { %v3151_v31 = vsel %vm3120_vm1, %v8446_v29, -inf  ;;  %v7065_v15 = vpop.f32.mrb[75].mxu1 }
 0x253   :  { %3152 = vmax.xlane.f32.xlu0 %v3151_v31  ;;  %v8450_v33 = vpop.f32.mrb[46].mxu0 }
 0x254   :  { %v7115_v36 = vpop.f32.mrb[47].mxu0  ;;  %v3181_v26 = vsel %vm3120_vm1, %v8450_v33, -inf }
 0x255   :  { %v8452_v37 = vpop.f32.mrb[76].mxu1 }
 0x256   :  { %v3154_v22 = vsel %vm3120_vm1, %v8452_v37, -inf  ;;  %v7070_v40 = vpop.f32.mrb[77].mxu1 }
 0x257   :  { %3155 = vmax.xlane.f32.xlu1 %v3154_v22  ;;  %v8456_v42 = vpop.f32.mrb[48].mxu0  ;;  %v3169_v40 = vsel %vm3120_vm1, %v8438_v41, -inf }
 0x258   :  { %v7125_v44 = vpop.f32.mrb[49].mxu0 }
 0x259   :  { %v8458_v47 = vpop.f32.mrb[78].mxu1 }
 0x25a   :  { %v3157_v48 = vsel %vm3120_vm1, %v8458_v47, -inf  ;;  %v7075_v25 = vpop.f32.mrb[79].mxu1 }
 0x25b   :  { %3158 = vmax.xlane.f32.xlu0 %v3157_v48  ;;  %v8462_v50 = vpop.f32.mrb[50].mxu0 }
 0x25c   :  { %v7135_v53 = vpop.f32.mrb[51].mxu0 }
 0x25d   :  { %v8464_v21 = vpop.f32.mrb[80].mxu1 }
 0x25e   :  { %v3160_v5 = vsel %vm3120_vm1, %v8464_v21, -inf  ;;  %v7080_v8 = vpop.f32.mrb[81].mxu1 }
 0x25f   :  { %3161 = vmax.xlane.f32.xlu1 %v3160_v5  ;;  %v8468_v9 = vpop.f32.mrb[52].mxu0  ;;  %v3175_v8 = vsel %vm3120_vm1, %v8444_v27, -inf }
 0x260   :  { %v7145_v19 = vpop.f32.mrb[53].mxu0 }
 0x261   :  { %v8470_v31 = vpop.f32.mrb[82].mxu1 }
 0x262   :  { %v3163_v15 = vsel %vm3120_vm1, %v8470_v31, -inf  ;;  %v7085_v36 = vpop.f32.mrb[83].mxu1 }
 0x263   :  { %3164 = vmax.xlane.f32.xlu0 %v3163_v15  ;;  %v8474_v22 = vpop.f32.mrb[54].mxu0 }
 0x264   :  { %v7155_v44 = vpop.f32.mrb[55].mxu0 }
 0x265   :  { %v8478_v48 = vpop.f32.mrb[84].mxu1 }
 0x266   :  { %v3166_v25 = vsel %vm3120_vm1, %v8478_v48, -inf  ;;  %v7090_v53 = vpop.f32.mrb[85].mxu1 }
 0x267   :  { %3170 = vmax.xlane.f32.xlu0 %v3169_v40  ;;  %3167 = vmax.xlane.f32.xlu1 %v3166_v25  ;;  %v8482_v5 = vpop.f32.mrb[56].mxu0 }
 0x268   :  { %v7165_v19 = vpop.f32.mrb[57].mxu0 }
 0x269   :  { %v8486_v15 = vpop.f32.mrb[86].mxu1  ;;  %v3187_v19 = vsel %vm3120_vm1, %v8456_v42, -inf }
 0x26a   :  { %v3172_v36 = vsel %vm3120_vm1, %v8486_v15, -inf  ;;  %v7100_v44 = vpop.f32.mrb[87].mxu1 }
 0x26b   :  { %3176 = vmax.xlane.f32.xlu0 %v3175_v8  ;;  %3173 = vmax.xlane.f32.xlu1 %v3172_v36  ;;  %v3193_v44 = vsel %vm3120_vm1, %v8462_v50, -inf }
 0x26d   :  { %v8492_v53 = vpop.f32.mrb[88].mxu1 }
 0x26e   :  { %v3178_v40 = vsel %vm3120_vm1, %v8492_v53, -inf  ;;  %v7110_v25 = vpop.f32.mrb[89].mxu1 }
 0x26f   :  { %3182 = vmax.xlane.f32.xlu0 %v3181_v26  ;;  %3179 = vmax.xlane.f32.xlu1 %v3178_v40  ;;  %v3199_v25 = vsel %vm3120_vm1, %v8468_v9, -inf }
 0x271   :  { %v8498_v3 = vpop.f32.mrb[90].mxu1 }
 0x272   :  { %v3184_v8 = vsel %vm3120_vm1, %v8498_v3, -inf  ;;  %v7120_v36 = vpop.f32.mrb[91].mxu1 }
 0x273   :  { %3188 = vmax.xlane.f32.xlu0 %v3187_v19  ;;  %3185 = vmax.xlane.f32.xlu1 %v3184_v8  ;;  %v3205_v36 = vsel %vm3120_vm1, %v8474_v22, -inf }
 0x275   :  { %v8504_v1 = vpop.f32.mrb[92].mxu1 }
 0x276   :  { %v3190_v26 = vsel %vm3120_vm1, %v8504_v1, -inf  ;;  %v7130_v40 = vpop.f32.mrb[93].mxu1 }
 0x277   :  { %3194 = vmax.xlane.f32.xlu0 %v3193_v44  ;;  %3191 = vmax.xlane.f32.xlu1 %v3190_v26  ;;  %v3211_v40 = vsel %vm3120_vm1, %v8482_v5, -inf }
 0x279   :  { %v8510_v4 = vpop.f32.mrb[94].mxu1 }
 0x27a   :  { %v3196_v19 = vsel %vm3120_vm1, %v8510_v4, -inf  ;;  %v7140_v8 = vpop.f32.mrb[95].mxu1 }
 0x27b   :  { %3200 = vmax.xlane.f32.xlu0 %v3199_v25  ;;  %3197 = vmax.xlane.f32.xlu1 %v3196_v19 }
 0x27d   :  { %v8516_v63 = vpop.f32.mrb[96].mxu1 }
 0x27e   :  { %v3202_v44 = vsel %vm3120_vm1, %v8516_v63, -inf  ;;  %v7150_v26 = vpop.f32.mrb[97].mxu1 }
 0x27f   :  { %3206 = vmax.xlane.f32.xlu0 %v3205_v36  ;;  %3203 = vmax.xlane.f32.xlu1 %v3202_v44 }
 0x281   :  { %v8522_v2 = vpop.f32.mrb[98].mxu1 }
 0x282   :  { %v3208_v25 = vsel %vm3120_vm1, %v8522_v2, -inf  ;;  %v7160_v19 = vpop.f32.mrb[99].mxu1 }
 0x283   :  { %3212 = vmax.xlane.f32.xlu0 %v3211_v40  ;;  %3209 = vmax.xlane.f32.xlu1 %v3208_v25 }
 0x285   :  { %v8526_v8 = vpop.f32.mrb[100].mxu1 }
 0x286   :  { %v3214_v61 = vsel %vm3120_vm1, %v8526_v8, -inf  ;;  %v7170_v0 = vpop.f32.mrb[101].mxu1 }
 0x287   :  { %3215 = vmax.xlane.f32.xlu1 %v3214_v61 }
 0x2b8   :  { %v3123_v36 = vpop.xlane.xlu0 %3122 }
 0x2b9   :  { %v3217_v44 = vsub.f32 %v8402_v24, %v3123_v36 }
 0x2bb   :  { %v3249_v26 = vmul.f32 1.442695, %v3217_v44 }
 0x2bc   :  { %v3126_v59 = vpop.xlane.xlu0 %3125 }
 0x2bd   :  { %7565 = vpow2.f32 %v3249_v26  ;;  %v3218_v62 = vsub.f32 %v8406_v28, %v3126_v59 }
 0x2bf   :  { %v3251_v52 = vmul.f32 1.442695, %v3218_v62 }
 0x2c0   :  { %v3129_v60 = vpop.xlane.xlu1 %3128 }
 0x2c1   :  { %7567 = vpow2.f32 %v3251_v52  ;;  %v3219_v40 = vsub.f32 %v8410_v32, %v3129_v60 }
 0x2c3   :  { %v3253_v25 = vmul.f32 1.442695, %v3219_v40 }
 0x2c4   :  { %v3132_v19 = vpop.xlane.xlu1 %3131 }
 0x2c5   :  { %7569 = vpow2.f32 %v3253_v25  ;;  %v3220_v39 = vsub.f32 %v8414_v35, %v3132_v19 }
 0x2c7   :  { %v8534_v0 = vpop.eup %7565  ;;  %v3255_v61 = vmul.f32 1.442695, %v3220_v39 }
 0x2c8   :  { %v3135_v56 = vpop.xlane.xlu0 %3134  ;;  %v3313_v24 = vsel %vm3120_vm1, %v8534_v0, 0.0 }
 0x2c9   :  { %7571 = vpow2.f32 %v3255_v61  ;;  %v3221_v59 = vsub.f32 %v8418_v38, %v3135_v56  ;;  %3314 = vadd.xlane.f32.xlu0 %v3313_v24 }
 0x2cb   :  { %v8539_v62 = vpop.eup %7567  ;;  %v3257_v52 = vmul.f32 1.442695, %v3221_v59 }
 0x2cc   :  { %v3138_v60 = vpop.xlane.xlu1 %3137  ;;  %v3316_v28 = vsel %vm3120_vm1, %v8539_v62, 0.0 }
 0x2cd   :  { %7573 = vpow2.f32 %v3257_v52  ;;  %v3222_v32 = vsub.f32 %v8422_v18, %v3138_v60  ;;  %3317 = vadd.xlane.f32.xlu1 %v3316_v28 }
 0x2cf   :  { %v8544_v39 = vpop.eup %7569  ;;  %v3259_v35 = vmul.f32 1.442695, %v3222_v32 }
 0x2d0   :  { %v3141_v36 = vpop.xlane.xlu0 %3140  ;;  %v3319_v44 = vsel %vm3120_vm1, %v8544_v39, 0.0 }
 0x2d1   :  { %7575 = vpow2.f32 %v3259_v35  ;;  %v3223_v56 = vsub.f32 %v8426_v45, %v3141_v36  ;;  %3320 = vadd.xlane.f32.xlu0 %v3319_v44 }
 0x2d3   :  { %v8549_v38 = vpop.eup %7571  ;;  %v3261_v26 = vmul.f32 1.442695, %v3223_v56 }
 0x2d4   :  { %v3144_v40 = vpop.xlane.xlu1 %3143  ;;  %v3322_v25 = vsel %vm3120_vm1, %v8549_v38, 0.0 }
 0x2d5   :  { %7577 = vpow2.f32 %v3261_v26  ;;  %v3224_v18 = vsub.f32 %v8430_v49, %v3144_v40  ;;  %3323 = vadd.xlane.f32.xlu1 %v3322_v25 }
 0x2d7   :  { %v8554_v19 = vpop.eup %7573  ;;  %v3263_v61 = vmul.f32 1.442695, %v3224_v18 }
 0x2d8   :  { %v3147_v24 = vpop.xlane.xlu0 %3146  ;;  %v3325_v59 = vsel %vm3120_vm1, %v8554_v19, 0.0 }
 0x2d9   :  { %7579 = vpow2.f32 %v3263_v61  ;;  %v3225_v45 = vsub.f32 %v8434_v51, %v3147_v24  ;;  %3326 = vadd.xlane.f32.xlu0 %v3325_v59 }
 0x2db   :  { %v8559_v52 = vpop.eup %7575  ;;  %v3265_v60 = vmul.f32 1.442695, %v3225_v45 }
 0x2dc   :  { %v3150_v28 = vpop.xlane.xlu1 %3149  ;;  %v3328_v32 = vsel %vm3120_vm1, %v8559_v52, 0.0 }
 0x2dd   :  { %7581 = vpow2.f32 %v3265_v60  ;;  %v3226_v49 = vsub.f32 %v8440_v7, %v3150_v28  ;;  %3329 = vadd.xlane.f32.xlu1 %v3328_v32 }
 0x2df   :  { %v8564_v35 = vpop.eup %7577  ;;  %v3267_v36 = vmul.f32 1.442695, %v3226_v49 }
 0x2e0   :  { %v3153_v44 = vpop.xlane.xlu0 %3152  ;;  %v3331_v56 = vsel %vm3120_vm1, %v8564_v35, 0.0 }
 0x2e1   :  { %7583 = vpow2.f32 %v3267_v36  ;;  %v3227_v51 = vsub.f32 %v8446_v29, %v3153_v44  ;;  %3332 = vadd.xlane.f32.xlu0 %v3331_v56 }
 0x2e3   :  { %v8569_v26 = vpop.eup %7579  ;;  %v3269_v40 = vmul.f32 1.442695, %v3227_v51 }
 0x2e4   :  { %v3156_v25 = vpop.xlane.xlu1 %3155  ;;  %v3334_v18 = vsel %vm3120_vm1, %v8569_v26, 0.0 }
 0x2e5   :  { %7585 = vpow2.f32 %v3269_v40  ;;  %v3228_v7 = vsub.f32 %v8452_v37, %v3156_v25  ;;  %3335 = vadd.xlane.f32.xlu1 %v3334_v18 }
 0x2e7   :  { %v8574_v61 = vpop.eup %7581  ;;  %v3271_v24 = vmul.f32 1.442695, %v3228_v7 }
 0x2e8   :  { %v3159_v59 = vpop.xlane.xlu0 %3158  ;;  %v3337_v45 = vsel %vm3120_vm1, %v8574_v61, 0.0 }
 0x2e9   :  { %7587 = vpow2.f32 %v3271_v24  ;;  %v3229_v29 = vsub.f32 %v8458_v47, %v3159_v59  ;;  %3338 = vadd.xlane.f32.xlu0 %v3337_v45 }
 0x2eb   :  { %v8579_v60 = vpop.eup %7583  ;;  %v3273_v28 = vmul.f32 1.442695, %v3229_v29 }
 0x2ec   :  { %v3162_v32 = vpop.xlane.xlu1 %3161  ;;  %v3340_v49 = vsel %vm3120_vm1, %v8579_v60, 0.0 }
 0x2ed   :  { %7589 = vpow2.f32 %v3273_v28  ;;  %v3230_v37 = vsub.f32 %v8464_v21, %v3162_v32  ;;  %3341 = vadd.xlane.f32.xlu1 %v3340_v49 }
 0x2ef   :  { %v8584_v36 = vpop.eup %7585  ;;  %v3275_v44 = vmul.f32 1.442695, %v3230_v37 }
 0x2f0   :  { %v3165_v56 = vpop.xlane.xlu0 %3164  ;;  %v3343_v51 = vsel %vm3120_vm1, %v8584_v36, 0.0 }
 0x2f1   :  { %7591 = vpow2.f32 %v3275_v44  ;;  %v3231_v47 = vsub.f32 %v8470_v31, %v3165_v56  ;;  %3344 = vadd.xlane.f32.xlu0 %v3343_v51 }
 0x2f3   :  { %v8589_v40 = vpop.eup %7587  ;;  %v3277_v25 = vmul.f32 1.442695, %v3231_v47 }
 0x2f4   :  { %v3171_v18 = vpop.xlane.xlu0 %3170  ;;  %v3168_v7 = vpop.xlane.xlu1 %3167  ;;  %v3346_v21 = vsel %vm3120_vm1, %v8589_v40, 0.0 }
 0x2f5   :  { %7593 = vpow2.f32 %v3277_v25  ;;  %v3233_v24 = vsub.f32 %v8438_v41, %v3171_v18  ;;  %v3232_v59 = vsub.f32 %v8478_v48, %v3168_v7  ;;  %3347 = vadd.xlane.f32.xlu1 %v3346_v21 }
 0x2f7   :  { %v8595_v45 = vpop.eup %7589  ;;  %v3281_v29 = vmul.f32 1.442695, %v3233_v24  ;;  %v3279_v28 = vmul.f32 1.442695, %v3232_v59 }
 0x2f8   :  { %v3177_v31 = vpop.xlane.xlu0 %3176  ;;  %v3174_v32 = vpop.xlane.xlu1 %3173  ;;  %v3349_v49 = vsel %vm3120_vm1, %v8595_v45, 0.0 }
 0x2f9   :  { %7595 = vpow2.f32 %v3281_v29  ;;  %v3235_v37 = vsub.f32 %v8444_v27, %v3177_v31  ;;  %v3234_v44 = vsub.f32 %v8486_v15, %v3174_v32  ;;  %3350 = vadd.xlane.f32.xlu0 %v3349_v49 }
 0x2fa   :  { %7597 = vpow2.f32 %v3279_v28 }
 0x2fb   :  { %v8601_v41 = vpop.eup %7591  ;;  %v3285_v48 = vmul.f32 1.442695, %v3235_v37  ;;  %v3283_v56 = vmul.f32 1.442695, %v3234_v44 }
 0x2fc   :  { %v3183_v51 = vpop.xlane.xlu0 %3182  ;;  %v3180_v47 = vpop.xlane.xlu1 %3179  ;;  %v3352_v25 = vsel %vm3120_vm1, %v8601_v41, 0.0 }
 0x2fd   :  { %7599 = vpow2.f32 %v3285_v48  ;;  %v3237_v18 = vsub.f32 %v8450_v33, %v3183_v51  ;;  %v3236_v7 = vsub.f32 %v8492_v53, %v3180_v47  ;;  %3353 = vadd.xlane.f32.xlu1 %v3352_v25 }
 0x2fe   :  { %7601 = vpow2.f32 %v3283_v56 }
 0x2ff   :  { %v8607_v27 = vpop.eup %7593  ;;  %v3289_v15 = vmul.f32 1.442695, %v3237_v18  ;;  %v3287_v21 = vmul.f32 1.442695, %v3236_v7 }
 0x300   :  { %v3189_v24 = vpop.xlane.xlu0 %3188  ;;  %v3186_v59 = vpop.xlane.xlu1 %3185  ;;  %v3355_v29 = vsel %vm3120_vm1, %v8607_v27, 0.0 }
 0x301   :  { %7603 = vpow2.f32 %v3289_v15  ;;  %v3239_v28 = vsub.f32 %v8456_v42, %v3189_v24  ;;  %v3238_v31 = vsub.f32 %v8498_v3, %v3186_v59  ;;  %3356 = vadd.xlane.f32.xlu0 %v3355_v29 }
 0x302   :  { %7605 = vpow2.f32 %v3287_v21 }
 0x303   :  { %v8613_v33 = vpop.eup %7595  ;;  %v3293_v53 = vmul.f32 1.442695, %v3239_v28  ;;  %v3291_v32 = vmul.f32 1.442695, %v3238_v31 }
 0x304   :  { %v8615_v49 = vpop.eup %7597  ;;  %v3195_v37 = vpop.xlane.xlu0 %3194  ;;  %v3361_v48 = vsel %vm3120_vm1, %v8613_v33, 0.0 }
 0x305   :  { %v3192_v44 = vpop.xlane.xlu1 %3191  ;;  %7607 = vpow2.f32 %v3293_v53  ;;  %v3241_v56 = vsub.f32 %v8462_v50, %v3195_v37  ;;  %3362 = vadd.xlane.f32.xlu0 %v3361_v48  ;;  %v3358_v3 = vsel %vm3120_vm1, %v8615_v49, 0.0 }
 0x306   :  { %v3240_v42 = vsub.f32 %v8504_v1, %v3192_v44  ;;  %7609 = vpow2.f32 %v3291_v32  ;;  %3359 = vadd.xlane.f32.xlu1 %v3358_v3 }
 0x307   :  { %v8623_v51 = vpop.eup %7599  ;;  %v3297_v47 = vmul.f32 1.442695, %v3241_v56 }
 0x308   :  { %v3295_v25 = vmul.f32 1.442695, %v3240_v42  ;;  %v8625_v18 = vpop.eup %7601  ;;  %v3201_v7 = vpop.xlane.xlu0 %3200  ;;  %v3367_v21 = vsel %vm3120_vm1, %v8623_v51, 0.0 }
 0x309   :  { %v3198_v15 = vpop.xlane.xlu1 %3197  ;;  %7611 = vpow2.f32 %v3297_v47  ;;  %v3243_v1 = vsub.f32 %v8468_v9, %v3201_v7  ;;  %3368 = vadd.xlane.f32.xlu0 %v3367_v21  ;;  %v3364_v24 = vsel %vm3120_vm1, %v8625_v18, 0.0 }
 0x30a   :  { %v3242_v50 = vsub.f32 %v8510_v4, %v3198_v15  ;;  %7613 = vpow2.f32 %v3295_v25  ;;  %3365 = vadd.xlane.f32.xlu1 %v3364_v24 }
 0x30b   :  { %v8633_v59 = vpop.eup %7603  ;;  %v3301_v29 = vmul.f32 1.442695, %v3243_v1 }
 0x30c   :  { %v3299_v28 = vmul.f32 1.442695, %v3242_v50  ;;  %v8635_v31 = vpop.eup %7605  ;;  %v3207_v53 = vpop.xlane.xlu0 %3206  ;;  %v3373_v37 = vsel %vm3120_vm1, %v8633_v59, 0.0 }
 0x30d   :  { %v3204_v32 = vpop.xlane.xlu1 %3203  ;;  %7615 = vpow2.f32 %v3301_v29  ;;  %v3245_v4 = vsub.f32 %v8474_v22, %v3207_v53  ;;  %3374 = vadd.xlane.f32.xlu0 %v3373_v37  ;;  %v3370_v44 = vsel %vm3120_vm1, %v8635_v31, 0.0 }
 0x30e   :  { %v3244_v9 = vsub.f32 %v8516_v63, %v3204_v32  ;;  %7617 = vpow2.f32 %v3299_v28  ;;  %3371 = vadd.xlane.f32.xlu1 %v3370_v44 }
 0x30f   :  { %v8643_v48 = vpop.eup %7607  ;;  %v3305_v56 = vmul.f32 1.442695, %v3245_v4 }
 0x310   :  { %v3303_v42 = vmul.f32 1.442695, %v3244_v9  ;;  %v8645_v3 = vpop.eup %7609  ;;  %v3213_v47 = vpop.xlane.xlu0 %3212  ;;  %v3379_v7 = vsel %vm3120_vm1, %v8643_v48, 0.0 }
 0x311   :  { %v3210_v25 = vpop.xlane.xlu1 %3209  ;;  %7619 = vpow2.f32 %v3305_v56  ;;  %v3247_v63 = vsub.f32 %v8482_v5, %v3213_v47  ;;  %3380 = vadd.xlane.f32.xlu0 %v3379_v7  ;;  %v3376_v15 = vsel %vm3120_vm1, %v8645_v3, 0.0 }
 0x312   :  { %v3246_v22 = vsub.f32 %v8522_v2, %v3210_v25  ;;  %7621 = vpow2.f32 %v3303_v42  ;;  %3377 = vadd.xlane.f32.xlu1 %v3376_v15 }
 0x313   :  { %v8653_v21 = vpop.eup %7611  ;;  %v3309_v1 = vmul.f32 1.442695, %v3247_v63 }
 0x314   :  { %v3307_v50 = vmul.f32 1.442695, %v3246_v22  ;;  %v8655_v24 = vpop.eup %7613  ;;  %v3385_v28 = vsel %vm3120_vm1, %v8653_v21, 0.0 }
 0x315   :  { %v3216_v29 = vpop.xlane.xlu1 %3215  ;;  %7623 = vpow2.f32 %v3309_v1  ;;  %3386 = vadd.xlane.f32.xlu0 %v3385_v28  ;;  %v3382_v2 = vsel %vm3120_vm1, %v8655_v24, 0.0 }
 0x316   :  { %v3248_v5 = vsub.f32 %v8526_v8, %v3216_v29  ;;  %7625 = vpow2.f32 %v3307_v50  ;;  %3383 = vadd.xlane.f32.xlu1 %v3382_v2 }
 0x317   :  { %v8662_v53 = vpop.eup %7615 }
 0x318   :  { %v3311_v32 = vmul.f32 1.442695, %v3248_v5  ;;  %v8664_v37 = vpop.eup %7617  ;;  %v3391_v4 = vsel %vm3120_vm1, %v8662_v53, 0.0 }
 0x319   :  { %3392 = vadd.xlane.f32.xlu0 %v3391_v4  ;;  %v3388_v9 = vsel %vm3120_vm1, %v8664_v37, 0.0 }
 0x31a   :  { %7627 = vpow2.f32 %v3311_v32  ;;  %3389 = vadd.xlane.f32.xlu1 %v3388_v9  ;;  %v732_v32 = vadd.f32 %v8380_v6, %v8386_v12  ;;  %v9061_v9 = vmov 0.0  }
 0x31b   :  { %v8670_v8 = vpop.eup %7619 }
 0x31c   :  { %v8672_v44 = vpop.eup %7621  ;;  %v3397_v56 = vsel %vm3120_vm1, %v8670_v8, 0.0 }
 0x31d   :  { %3398 = vadd.xlane.f32.xlu0 %v3397_v56  ;;  %v3394_v42 = vsel %vm3120_vm1, %v8672_v44, 0.0 }
 0x31e   :  { %3395 = vadd.xlane.f32.xlu1 %v3394_v42 }
 0x31f   :  { %v8678_v47 = vpop.eup %7623 }
 0x320   :  { %v8680_v25 = vpop.eup %7625  ;;  %v3403_v7 = vsel %vm3120_vm1, %v8678_v47, 0.0 }
 0x321   :  { %3404 = vadd.xlane.f32.xlu0 %v3403_v7  ;;  %v3400_v63 = vsel %vm3120_vm1, %v8680_v25, 0.0 }
 0x322   :  { %3401 = vadd.xlane.f32.xlu1 %v3400_v63 }
 0x324   :  { %v8686_v22 = vpop.eup %7627 }
 0x325   :  { %v3406_v15 = vsel %vm3120_vm1, %v8686_v22, 0.0 }
 0x326   :  { %3407 = vadd.xlane.f32.xlu1 %v3406_v15 }
 0x356   :  { %v3315_v1 = vpop.xlane.xlu0 %3314 }
 0x357   :  { %7629 = vrcp.f32 %v3315_v1 }
 0x35a   :  { %v3318_v50 = vpop.xlane.xlu1 %3317 }
 0x35b   :  { %7631 = vrcp.f32 %v3318_v50 }
 0x35e   :  { %v3321_v29 = vpop.xlane.xlu0 %3320 }
 0x35f   :  { %7633 = vrcp.f32 %v3321_v29 }
 0x361   :  { %v7630_v28 = vpop.eup %7629 }
 0x362   :  { %v3441_v5 = vmul.f32 %v7630_v28, %v8534_v0  ;;  %v3324_v2 = vpop.xlane.xlu1 %3323  ;;  %v737_v0 = vadd.f32 %v8384_v10, %v8380_v6 }
 0x363   :  { %7635 = vrcp.f32 %v3324_v2 }
 0x364   :  { %7174 = vmatmul.mubr.msk.f32.vlgmr.msra.gmra.mrb[58].mxu0 %vm3120_vm1, %v3441_v5 }
 0x365   :  { %v7632_v4 = vpop.eup %7631  ;;  %7182 = vmatpush3.msra.mxu0 %v732_v32  ;;  %7183 = vmatprep.mubr.msk.f32.mxu0 %vm7842_vm0, %v9061_v9 }
 0x366   :  { %v3442_v56 = vmul.f32 %v7632_v4, %v8539_v62  ;;  %v3327_v42 = vpop.xlane.xlu0 %3326  ;;  %7191 = vmatprep.subr.mxu0 %v9061_v9  ;;  %v742_v62 = vadd.f32 %v8380_v6, %v8392_v11 }
 0x367   :  { %7637 = vrcp.f32 %v3327_v42 }
 0x368   :  { %7179 = vmatmul.mubr.msk.f32.vlgmr.msra.gmra.mrb[102].mxu1 %vm3120_vm1, %v3442_v56 }
 0x369   :  { %v7634_v12 = vpop.eup %7633  ;;  %7187 = vmatpush3.msra.mxu1 %v737_v0  ;;  %7188 = vmatprep.mubr.msk.f32.mxu1 %vm7842_vm0, %v9061_v9 }
 0x36a   :  { %v3443_v7 = vmul.f32 %v7634_v12, %v8544_v39  ;;  %v3330_v63 = vpop.xlane.xlu1 %3329  ;;  %7196 = vmatprep.subr.mxu1 %v9061_v9  ;;  %v747_v39 = vadd.f32 %v8390_v13, %v8380_v6 }
 0x36b   :  { %7639 = vrcp.f32 %v3330_v63 }
 0x36c   :  { %7184 = vmatmul.mubr.msk.f32.vlgmr.msra.gmra.mrb[60].mxu0 %vm3120_vm1, %v3443_v7 }
 0x36d   :  { %v7636_v10 = vpop.eup %7635  ;;  %7192 = vmatpush3.msra.mxu0 %v742_v62  ;;  %7193 = vmatprep.mubr.msk.f32.mxu0 %vm7842_vm0, %v9061_v9 }
 0x36e   :  { %v3444_v15 = vmul.f32 %v7636_v10, %v8549_v38  ;;  %v3333_v1 = vpop.xlane.xlu0 %3332  ;;  %7201 = vmatprep.subr.mxu0 %v9061_v9  ;;  %v752_v38 = vadd.f32 %v8380_v6, %v8396_v16 }
 0x36f   :  { %7641 = vrcp.f32 %v3333_v1 }
 0x370   :  { %7189 = vmatmul.mubr.msk.f32.vlgmr.msra.gmra.mrb[104].mxu1 %vm3120_vm1, %v3444_v15 }
 0x371   :  { %v7638_v11 = vpop.eup %7637  ;;  %7197 = vmatpush3.msra.mxu1 %v747_v39  ;;  %7198 = vmatprep.mubr.msk.f32.mxu1 %vm7842_vm0, %v9061_v9 }
 0x372   :  { %v3445_v50 = vmul.f32 %v7638_v11, %v8554_v19  ;;  %v3336_v29 = vpop.xlane.xlu1 %3335  ;;  %7206 = vmatprep.subr.mxu1 %v9061_v9  ;;  %v757_v19 = vadd.f32 %v8394_v14, %v8380_v6 }
 0x373   :  { %7643 = vrcp.f32 %v3336_v29 }
 0x374   :  { %7194 = vmatmul.mubr.msk.f32.vlgmr.msra.gmra.mrb[62].mxu0 %vm3120_vm1, %v3445_v50 }
 0x375   :  { %v7640_v13 = vpop.eup %7639  ;;  %7202 = vmatpush3.msra.mxu0 %v752_v38  ;;  %7203 = vmatprep.mubr.msk.f32.mxu0 %vm7842_vm0, %v9061_v9 }
 0x376   :  { %v3446_v28 = vmul.f32 %v7640_v13, %v8559_v52  ;;  %v3339_v5 = vpop.xlane.xlu0 %3338  ;;  %7211 = vmatprep.subr.mxu0 %v9061_v9  ;;  %v762_v52 = vadd.f32 %v8380_v6, %v8400_v20 }
 0x377   :  { %7645 = vrcp.f32 %v3339_v5 }
 0x378   :  { %7199 = vmatmul.mubr.msk.f32.vlgmr.msra.gmra.mrb[106].mxu1 %vm3120_vm1, %v3446_v28 }
 0x379   :  { %v7642_v16 = vpop.eup %7641  ;;  %7207 = vmatpush3.msra.mxu1 %v757_v19  ;;  %7208 = vmatprep.mubr.msk.f32.mxu1 %vm7842_vm0, %v9061_v9 }
 0x37a   :  { %v3447_v2 = vmul.f32 %v7642_v16, %v8564_v35  ;;  %v3342_v32 = vpop.xlane.xlu1 %3341  ;;  %7216 = vmatprep.subr.mxu1 %v9061_v9  ;;  %v767_v35 = vadd.f32 %v8398_v17, %v8380_v6 }
 0x37b   :  { %7647 = vrcp.f32 %v3342_v32 }
 0x37c   :  { %7204 = vmatmul.mubr.msk.f32.vlgmr.msra.gmra.mrb[64].mxu0 %vm3120_vm1, %v3447_v2 }
 0x37d   :  { %v7644_v14 = vpop.eup %7643  ;;  %7212 = vmatpush3.msra.mxu0 %v762_v52  ;;  %7213 = vmatprep.mubr.msk.f32.mxu0 %vm7842_vm0, %v9061_v9 }
 0x37e   :  { %v3448_v4 = vmul.f32 %v7644_v14, %v8569_v26  ;;  %v3345_v56 = vpop.xlane.xlu0 %3344  ;;  %7221 = vmatprep.subr.mxu0 %v9061_v9  ;;  %v772_v26 = vadd.f32 %v8380_v6, %v8288_v55 }
 0x37f   :  { %7649 = vrcp.f32 %v3345_v56 }
 0x380   :  { %7209 = vmatmul.mubr.msk.f32.vlgmr.msra.gmra.mrb[108].mxu1 %vm3120_vm1, %v3448_v4 }
 0x381   :  { %v7646_v20 = vpop.eup %7645  ;;  %7217 = vmatpush3.msra.mxu1 %v767_v35  ;;  %7218 = vmatprep.mubr.msk.f32.mxu1 %vm7842_vm0, %v9061_v9 }
 0x382   :  { %v3449_v42 = vmul.f32 %v7646_v20, %v8574_v61  ;;  %v3348_v0 = vpop.xlane.xlu1 %3347  ;;  %7226 = vmatprep.subr.mxu1 %v9061_v9  ;;  %v777_v61 = vadd.f32 %v8282_v54, %v8380_v6  ;;  %v9063_v20 = vld [vmem:[#allocation16_spill] sm:$0xff] }
 0x383   :  { %7651 = vrcp.f32 %v3348_v0 }
 0x384   :  { %7214 = vmatmul.mubr.msk.f32.vlgmr.msra.gmra.mrb[66].mxu0 %vm3120_vm1, %v3449_v42 }
 0x385   :  { %v7648_v17 = vpop.eup %7647  ;;  %7222 = vmatpush3.msra.mxu0 %v772_v26  ;;  %7223 = vmatprep.mubr.msk.f32.mxu0 %vm7842_vm0, %v9061_v9 }
 0x386   :  { %v3450_v12 = vmul.f32 %v7648_v17, %v8579_v60  ;;  %v3351_v7 = vpop.xlane.xlu0 %3350  ;;  %7231 = vmatprep.subr.mxu0 %v9061_v9  ;;  %v782_v60 = vadd.f32 %v8380_v6, %v8299_v43  ;;  %v9064_v17 = vld [vmem:[#allocation20_spill] sm:$0xff] }
 0x387   :  { %7653 = vrcp.f32 %v3351_v7 }
 0x388   :  { %7219 = vmatmul.mubr.msk.f32.vlgmr.msra.gmra.mrb[110].mxu1 %vm3120_vm1, %v3450_v12 }
 0x389   :  { %v7650_v55 = vpop.eup %7649  ;;  %7227 = vmatpush3.msra.mxu1 %v777_v61  ;;  %7228 = vmatprep.mubr.msk.f32.mxu1 %vm7842_vm0, %v9061_v9 }
 0x38a   :  { %v3451_v63 = vmul.f32 %v7650_v55, %v8584_v36  ;;  %v3354_v62 = vpop.xlane.xlu1 %3353  ;;  %7236 = vmatprep.subr.mxu1 %v9061_v9  ;;  %v787_v36 = vadd.f32 %v8296_v23, %v8380_v6  ;;  %v9065_v55 = vld [vmem:[#allocation17_spill] sm:$0xff] }
 0x38b   :  { %7655 = vrcp.f32 %v3354_v62 }
 0x38c   :  { %7224 = vmatmul.mubr.msk.f32.vlgmr.msra.gmra.mrb[68].mxu0 %vm3120_vm1, %v3451_v63 }
 0x38d   :  { %v7652_v54 = vpop.eup %7651  ;;  %7232 = vmatpush3.msra.mxu0 %v782_v60  ;;  %7233 = vmatprep.mubr.msk.f32.mxu0 %vm7842_vm0, %v9061_v9 }
 0x38e   :  { %v3452_v10 = vmul.f32 %v7652_v54, %v8589_v40  ;;  %v3357_v15 = vpop.xlane.xlu0 %3356  ;;  %7241 = vmatprep.subr.mxu0 %v9061_v9  ;;  %v792_v40 = vadd.f32 %v8380_v6, %v8310_v57  ;;  %v9066_v54 = vld [vmem:[#allocation22_spill] sm:$0xff] }
 0x38f   :  { %7657 = vrcp.f32 %v3357_v15 }
 0x390   :  { %7229 = vmatmul.mubr.msk.f32.vlgmr.msra.gmra.mrb[112].mxu1 %vm3120_vm1, %v3452_v10 }
 0x391   :  { %v7654_v43 = vpop.eup %7653  ;;  %7237 = vmatpush3.msra.mxu1 %v787_v36  ;;  %7238 = vmatprep.mubr.msk.f32.mxu1 %vm7842_vm0, %v9061_v9 }
 0x392   :  { %v3453_v1 = vmul.f32 %v7654_v43, %v8595_v45  ;;  %v3363_v39 = vpop.xlane.xlu0 %3362  ;;  %7246 = vmatprep.subr.mxu1 %v9061_v9  ;;  %v797_v45 = vadd.f32 %v8307_v30, %v8380_v6  ;;  %v9067_v43 = vld [vmem:[#allocation19_spill] sm:$0xff] }
 0x393   :  { %7659 = vrcp.f32 %v3363_v39  ;;  %v3360_v11 = vpop.xlane.xlu1 %3359 }
 0x394   :  { %7661 = vrcp.f32 %v3360_v11  ;;  %7234 = vmatmul.mubr.msk.f32.vlgmr.msra.gmra.mrb[70].mxu0 %vm3120_vm1, %v3453_v1  ;;  %v9068_v11 = vld [vmem:[#allocation24_spill] sm:$0xff] }
 0x395   :  { %v7656_v23 = vpop.eup %7655  ;;  %7242 = vmatpush3.msra.mxu0 %v792_v40  ;;  %7243 = vmatprep.mubr.msk.f32.mxu0 %vm7842_vm0, %v9061_v9 }
 0x396   :  { %v3454_v50 = vmul.f32 %v7656_v23, %v8601_v41  ;;  %v3369_v29 = vpop.xlane.xlu0 %3368  ;;  %7251 = vmatprep.subr.mxu0 %v9061_v9  ;;  %v802_v41 = vadd.f32 %v8380_v6, %v8319_v34  ;;  %v8799_v34 = vld [vmem:[%s9037_s2] ss:$0 sm:$0xff] }
 0x397   :  { %7663 = vrcp.f32 %v3369_v29  ;;  %v3366_v57 = vpop.xlane.xlu1 %3365  ;;  %v812_v6 = vadd.f32 %v8799_v34, %v8328_v46  ;;  %v807_v52 = vadd.f32 %v8799_v34, %v8316_v58  ;;  %v9062_v46 = vld [vmem:[#allocation18_spill] sm:$0xff]  ;;  %v832_v12 = vadd.f32 %v8799_v34, %v9064_v17  ;;  %v5816_v17 = vld [vmem:[#allocation10 + $0x38] sm:$0xff] }
 0x398   :  { %7665 = vrcp.f32 %v3366_v57  ;;  %7239 = vmatmul.mubr.msk.f32.vlgmr.msra.gmra.mrb[114].mxu1 %vm3120_vm1, %v3454_v50  ;;  %v842_v10 = vadd.f32 %v8799_v34, %v9066_v54  ;;  %v852_v23 = vadd.f32 %v8799_v34, %v9068_v11 }
 0x399   :  { %v7658_v38 = vpop.eup %7657  ;;  %7247 = vmatpush3.msra.mxu1 %v797_v45  ;;  %7248 = vmatprep.mubr.msk.f32.mxu1 %vm7842_vm0, %v9061_v9  ;;  %v9069_v45 = vld [vmem:[#allocation21_spill] sm:$0xff] }
 0x39a   :  { %v3455_v13 = vmul.f32 %v7658_v38, %v8607_v27  ;;  %v3375_v28 = vpop.xlane.xlu0 %3374  ;;  %7256 = vmatprep.subr.mxu1 %v9061_v9 }
 0x39b   :  { %7667 = vrcp.f32 %v3375_v28  ;;  %v3372_v30 = vpop.xlane.xlu1 %3371 }
 0x39c   :  { %7669 = vrcp.f32 %v3372_v30  ;;  %7244 = vmatmul.mubr.msk.f32.vlgmr.msra.gmra.mrb[72].mxu0 %vm3120_vm1, %v3455_v13  ;;  %v9070_v13 = vld [vmem:[#allocation26_spill] sm:$0xff] }
 0x39d   :  { %v7660_v5 = vpop.eup %7659  ;;  %7252 = vmatpush3.msra.mxu0 %v802_v41  ;;  %7253 = vmatprep.mubr.msk.f32.mxu0 %vm7842_vm0, %v9061_v9  ;;  %v862_v28 = vadd.f32 %v8799_v34, %v9070_v13 }
 0x39e   :  { %v7662_v19 = vpop.eup %7661  ;;  %v3457_v16 = vmul.f32 %v7660_v5, %v8613_v33  ;;  %v3381_v27 = vpop.xlane.xlu0 %3380  ;;  %7261 = vmatprep.subr.mxu0 %v9061_v9  ;;  %v9071_v5 = vld [vmem:[#allocation23_spill] sm:$0xff] }
 0x39f   :  { %v3456_v2 = vmul.f32 %v7662_v19, %v8615_v49  ;;  %7671 = vrcp.f32 %v3381_v27  ;;  %v3378_v32 = vpop.xlane.xlu1 %3377  ;;  %v822_v49 = vadd.f32 %v8799_v34, %v9062_v46  ;;  %v857_v19 = vadd.f32 %v8799_v34, %v9071_v5 }
 0x3a0   :  { %7673 = vrcp.f32 %v3378_v32  ;;  %7254 = vmatmul.mubr.msk.f32.vlgmr.msra.gmra.mrb[74].mxu0 %vm3120_vm1, %v3457_v16  ;;  %v5809_v16 = vld [vmem:[#allocation10] sm:$0xff] }
 0x3a1   :  { %v7664_v33 = vpop.eup %7663  ;;  %7249 = vmatmul.mubr.msk.f32.vlgmr.msra.gmra.mrb[116].mxu1 %vm3120_vm1, %v3456_v2  ;;  %7262 = vmatpush3.msra.mxu0 %v812_v6  ;;  %v9072_v2 = vld [vmem:[#allocation28_spill] sm:$0xff] }
 0x3a2   :  { %v7666_v14 = vpop.eup %7665  ;;  %v3459_v4 = vmul.f32 %v7664_v33, %v8623_v51  ;;  %7257 = vmatpush3.msra.mxu1 %v807_v52  ;;  %v3387_v56 = vpop.xlane.xlu0 %3386  ;;  %7258 = vmatprep.mubr.msk.f32.mxu1 %vm7842_vm0, %v9061_v9  ;;  %v817_v51 = vadd.f32 %v8799_v34, %v9063_v20  ;;  %v872_v32 = vadd.f32 %v8799_v34, %v9072_v2  ;;  %v9073_v33 = vld [vmem:[#allocation25_spill] sm:$0xff]  ;;  %v5813_v20 = vld [vmem:[#allocation10 + $0x20] sm:$0xff] }
 0x3a3   :  { %v3458_v58 = vmul.f32 %v7666_v14, %v8625_v18  ;;  %7675 = vrcp.f32 %v3387_v56  ;;  %v3384_v35 = vpop.xlane.xlu1 %3383  ;;  %7263 = vmatprep.mubr.msk.f32.mxu0 %vm7842_vm0, %v9061_v9  ;;  %7266 = vmatprep.subr.mxu1 %v9061_v9  ;;  %v867_v14 = vadd.f32 %v8799_v34, %v9073_v33  ;;  %v5812_v56 = vld [vmem:[#allocation10 + $0x18] sm:$0xff] }
 0x3a4   :  { %7677 = vrcp.f32 %v3384_v35  ;;  %7271 = vmatprep.subr.mxu0 %v9061_v9  ;;  %7264 = vmatmul.mubr.msk.f32.vlgmr.msra.gmra.mrb[76].mxu0 %vm3120_vm1, %v3459_v4  ;;  %v5811_v4 = vld [vmem:[#allocation10 + $0x10] sm:$0xff] }
 0x3a5   :  { %v7668_v42 = vpop.eup %7667  ;;  %7259 = vmatmul.mubr.msk.f32.vlgmr.msra.gmra.mrb[118].mxu1 %vm3120_vm1, %v3458_v58  ;;  %7272 = vmatpush3.msra.mxu0 %v822_v49  ;;  %v7511_v35 = vpack.c.bf16 %v5812_v56, %v5811_v4 }
 0x3a6   :  { %v7670_v18 = vpop.eup %7669  ;;  %v3461_v0 = vmul.f32 %v7668_v42, %v8633_v59  ;;  %7267 = vmatpush3.msra.mxu1 %v817_v51  ;;  %v3393_v26 = vpop.xlane.xlu0 %3392  ;;  %7268 = vmatprep.mubr.msk.f32.mxu1 %vm7842_vm0, %v9061_v9  ;;  %v827_v59 = vadd.f32 %v8799_v34, %v9065_v55  ;;  %v5814_v51 = vld [vmem:[#allocation10 + $0x28] sm:$0xff]  ;;  %v9074_v42 = vld [vmem:[#allocation27_spill] sm:$0xff]  ;;  %v5819_v55 = vld [vmem:[#allocation10 + $0x50] sm:$0xff] }
 0x3a7   :  { %v3460_v7 = vmul.f32 %v7670_v18, %v8635_v31  ;;  %7679 = vrcp.f32 %v3393_v26  ;;  %v3390_v61 = vpop.xlane.xlu1 %3389  ;;  %7273 = vmatprep.mubr.msk.f32.mxu0 %vm7842_vm0, %v9061_v9  ;;  %7276 = vmatprep.subr.mxu1 %v9061_v9  ;;  %v877_v18 = vadd.f32 %v8799_v34, %v9074_v42  ;;  %v5815_v26 = vld [vmem:[#allocation10 + $0x30] sm:$0xff] }
 0x3a8   :  { %7681 = vrcp.f32 %v3390_v61  ;;  %7281 = vmatprep.subr.mxu0 %v9061_v9  ;;  %7274 = vmatmul.mubr.msk.f32.vlgmr.msra.gmra.mrb[78].mxu0 %vm3120_vm1, %v3461_v0 }
 0x3a9   :  { %v7672_v63 = vpop.eup %7671  ;;  %7269 = vmatmul.mubr.msk.f32.vlgmr.msra.gmra.mrb[120].mxu1 %vm3120_vm1, %v3460_v7  ;;  %7282 = vmatpush3.msra.mxu0 %v832_v12  ;;  %v5817_v12 = vld [vmem:[#allocation10 + $0x40] sm:$0xff]  ;;  %v5818_v7 = vld [vmem:[#allocation10 + $0x48] sm:$0xff] }
 0x3aa   :  { %v7674_v31 = vpop.eup %7673  ;;  %v3463_v62 = vmul.f32 %v7672_v63, %v8643_v48  ;;  %7277 = vmatpush3.msra.mxu1 %v827_v59  ;;  %v3399_v60 = vpop.xlane.xlu0 %3398  ;;  %7278 = vmatprep.mubr.msk.f32.mxu1 %vm7842_vm0, %v9061_v9  ;;  %v837_v48 = vadd.f32 %v8799_v34, %v9067_v43  ;;  %v7523_v61 = vpack.c.bf16 %v5818_v7, %v5817_v12  ;;  %v5820_v59 = vld [vmem:[#allocation10 + $0x58] sm:$0xff]  ;;  %v5821_v63 = vld [vmem:[#allocation10 + $0x60] sm:$0xff] }
 0x3ab   :  { %v3462_v15 = vmul.f32 %v7674_v31, %v8645_v3  ;;  %7683 = vrcp.f32 %v3399_v60  ;;  %v3396_v36 = vpop.xlane.xlu1 %3395  ;;  %7283 = vmatprep.mubr.msk.f32.mxu0 %vm7842_vm0, %v9061_v9  ;;  %7286 = vmatprep.subr.mxu1 %v9061_v9  ;;  %v5824_v60 = vld [vmem:[#allocation10 + $0x78] sm:$0xff] }
 0x3ac   :  { %7685 = vrcp.f32 %v3396_v36  ;;  %7291 = vmatprep.subr.mxu0 %v9061_v9  ;;  %7284 = vmatmul.mubr.msk.f32.vlgmr.msra.gmra.mrb[80].mxu0 %vm3120_vm1, %v3463_v62  ;;  %v5823_v62 = vld [vmem:[#allocation10 + $0x70] sm:$0xff] }
 0x3ad   :  { %v7676_v1 = vpop.eup %7675  ;;  %7279 = vmatmul.mubr.msk.f32.vlgmr.msra.gmra.mrb[122].mxu1 %vm3120_vm1, %v3462_v15  ;;  %7292 = vmatpush3.msra.mxu0 %v842_v10  ;;  %v7535_v54 = vpack.c.bf16 %v5824_v60, %v5823_v62 }
 0x3ae   :  { %v7678_v3 = vpop.eup %7677  ;;  %v3465_v39 = vmul.f32 %v7676_v1, %v8653_v21  ;;  %7287 = vmatpush3.msra.mxu1 %v837_v48  ;;  %v3405_v40 = vpop.xlane.xlu0 %3404  ;;  %7288 = vmatprep.mubr.msk.f32.mxu1 %vm7842_vm0, %v9061_v9  ;;  %v847_v21 = vadd.f32 %v8799_v34, %v9069_v45  ;;  %v7519_v34 = vpack.c.bf16 %v5816_v17, %v5815_v26 }
 0x3af   :  { %v3464_v50 = vmul.f32 %v7678_v3, %v8655_v24  ;;  %7687 = vrcp.f32 %v3405_v40  ;;  %v3402_v29 = vpop.xlane.xlu1 %3401  ;;  %7293 = vmatprep.mubr.msk.f32.mxu0 %vm7842_vm0, %v9061_v9  ;;  %7296 = vmatprep.subr.mxu1 %v9061_v9 }
 0x3b0   :  { %7689 = vrcp.f32 %v3402_v29  ;;  %7301 = vmatprep.subr.mxu0 %v9061_v9  ;;  %7294 = vmatmul.mubr.msk.f32.vlgmr.msra.gmra.mrb[82].mxu0 %vm3120_vm1, %v3465_v39 }
 0x3b1   :  { %v7680_v57 = vpop.eup %7679  ;;  %7289 = vmatmul.mubr.msk.f32.vlgmr.msra.gmra.mrb[124].mxu1 %vm3120_vm1, %v3464_v50  ;;  %7302 = vmatpush3.msra.mxu0 %v852_v23 }
 0x3b2   :  { %v7682_v24 = vpop.eup %7681  ;;  %v3467_v38 = vmul.f32 %v7680_v57, %v8662_v53  ;;  %7297 = vmatpush3.msra.mxu1 %v847_v21  ;;  %7298 = vmatprep.mubr.msk.f32.mxu1 %vm7842_vm0, %v9061_v9 }
 0x3b3   :  { %v3466_v41 = vmul.f32 %v7682_v24, %v8664_v37  ;;  %v3408_v30 = vpop.xlane.xlu1 %3407  ;;  %7303 = vmatprep.mubr.msk.f32.mxu0 %vm7842_vm0, %v9061_v9  ;;  %7306 = vmatprep.subr.mxu1 %v9061_v9  ;;  %v5810_v37 = vld [vmem:[#allocation10 + $0x8] sm:$0xff] }
 0x3b4   :  { %7691 = vrcp.f32 %v3408_v30  ;;  %7311 = vmatprep.subr.mxu0 %v9061_v9  ;;  %7304 = vmatmul.mubr.msk.f32.vlgmr.msra.gmra.mrb[84].mxu0 %vm3120_vm1, %v3467_v38 }
 0x3b5   :  { %v7684_v53 = vpop.eup %7683  ;;  %7299 = vmatmul.mubr.msk.f32.vlgmr.msra.gmra.mrb[126].mxu1 %vm3120_vm1, %v3466_v41  ;;  %7312 = vmatpush3.msra.mxu0 %v862_v28 }
 0x3b6   :  { %v7686_v27 = vpop.eup %7685  ;;  %v3469_v6 = vmul.f32 %v7684_v53, %v8670_v8  ;;  %7307 = vmatpush3.msra.mxu1 %v857_v19  ;;  %7308 = vmatprep.mubr.msk.f32.mxu1 %vm7842_vm0, %v9061_v9  ;;  %v7507_v8 = vpack.c.bf16 %v5810_v37, %v5809_v16 }
 0x3b7   :  { %v3468_v52 = vmul.f32 %v7686_v27, %v8672_v44  ;;  %7313 = vmatprep.mubr.msk.f32.mxu0 %vm7842_vm0, %v9061_v9  ;;  %7316 = vmatprep.subr.mxu1 %v9061_v9 }
 0x3b8   :  { %7321 = vmatprep.subr.mxu0 %v9061_v9  ;;  %7314 = vmatmul.mubr.msk.f32.vlgmr.msra.gmra.mrb[86].mxu0 %vm3120_vm1, %v3469_v6 }
 0x3b9   :  { %v7688_v46 = vpop.eup %7687  ;;  %7309 = vmatmul.mubr.msk.f32.vlgmr.msra.gmra.mrb[128].mxu1 %vm3120_vm1, %v3468_v52  ;;  %7322 = vmatpush3.msra.mxu0 %v872_v32 }
 0x3ba   :  { %v7690_v44 = vpop.eup %7689  ;;  %v3471_v49 = vmul.f32 %v7688_v46, %v8678_v47  ;;  %7317 = vmatpush3.msra.mxu1 %v867_v14  ;;  %7318 = vmatprep.mubr.msk.f32.mxu1 %vm7842_vm0, %v9061_v9 }
 0x3bb   :  { %v3470_v58 = vmul.f32 %v7690_v44, %v8680_v25  ;;  %7323 = vmatprep.mubr.msk.f32.mxu0 %vm7842_vm0, %v9061_v9  ;;  %7326 = vmatprep.subr.mxu1 %v9061_v9  ;;  %v7515_v25 = vpack.c.bf16 %v5814_v51, %v5813_v20 }
 0x3bc   :  { %7324 = vmatmul.mubr.msk.f32.vlgmr.msra.gmra.mrb[88].mxu0 %vm3120_vm1, %v3471_v49  ;;  %7508 = vmatprep.subr.bf16.mxu0 %v7507_v8 }
 0x3bd   :  { %7319 = vmatmul.mubr.msk.f32.vlgmr.msra.gmra.mrb[130].mxu1 %vm3120_vm1, %v3470_v58  ;;  %7510 = vmatpush3.bf16.msra.mxu0 %v7507_v8 }
 0x3be   :  { %v7692_v47 = vpop.eup %7691  ;;  %7327 = vmatpush3.msra.mxu1 %v877_v18  ;;  %7328 = vmatprep.mubr.msk.f32.mxu1 %vm7842_vm0, %v9061_v9  ;;  %v7527_v9 = vpack.c.bf16 %v5820_v59, %v5819_v55 }
 0x3bf   :  { %v3472_v0 = vmul.f32 %v7692_v47, %v8686_v22  ;;  %7512 = vmatprep.subr.bf16.mxu0 %v7511_v35  ;;  %v5822_v22 = vld [vmem:[#allocation10 + $0x68] sm:$0xff] }
 0x3c0   :  { %v7531_v31 = vpack.c.bf16 %v5822_v22, %v5821_v63 }
 0x3c1   :  { %7329 = vmatmul.mubr.msk.f32.vlgmr.msra.gmra.mrb[132].mxu1 %vm3120_vm1, %v3472_v0  ;;  %7514 = vmatpush3.bf16.msra.mxu0 %v7511_v35 }
 0x3c2   :  { %7516 = vmatprep.subr.bf16.mxu0 %v7515_v25 }
 0x3c5   :  { %7518 = vmatpush3.bf16.msra.mxu0 %v7515_v25 }
 0x3c6   :  { %7520 = vmatprep.subr.bf16.mxu0 %v7519_v34 }
 0x3c9   :  { %7522 = vmatpush3.bf16.msra.mxu0 %v7519_v34 }
 0x3ca   :  { %7524 = vmatprep.subr.bf16.mxu0 %v7523_v61 }
 0x3cd   :  { %7526 = vmatpush3.bf16.msra.mxu0 %v7523_v61 }
 0x3ce   :  { %7528 = vmatprep.subr.bf16.mxu0 %v7527_v9 }
 0x3d1   :  { %7530 = vmatpush3.bf16.msra.mxu0 %v7527_v9 }
 0x3d2   :  { %7532 = vmatprep.subr.bf16.mxu0 %v7531_v31 }
 0x3d5   :  { %7534 = vmatpush3.bf16.msra.mxu0 %v7531_v31 }
 0x3d6   :  { %7536 = vmatprep.subr.bf16.mxu0 %v7535_v54 }
 0x3d9   :  { %7538 = vmatpush3.bf16.msra.mxu0 %v7535_v54 }
 0x437   :  { %v3542_v10 = vpop.f32.mrb[58].mxu0 }
 0x438   :  { %v7175_v15 = vpop.f32.mrb[59].mxu0  ;;  %7363 = vmatprep.mubr.f32.mxu0 %v3542_v10  ;;  %v8910_v10 = vld [vmem:[%s9043_s8] ss:$0 sm:$0xff]  ;;  %s7843_s8 = smov [#allocation11]  }
 0x43b   :  { %v3615_v36 = vpop.f32.mrb[102].mxu1 }
 0x43c   :  { %v7180_v43 = vpop.f32.mrb[103].mxu1  ;;  %7364 = vmatmul.mubr.f32.vlgmr.msra.gmra.mrb[90].mxu0 %v3615_v36  ;;  %v8915_v36 = vld [vmem:[%s9044_s9] ss:$0 sm:$0xff]  ;;  %s6400_s9 = sshll.u32 %s7843_s8, 4  ;;  %s6401_s9 = int_to_ptr.vmem [resolvable:$true] %s6400_s9 }
 0x43d   :  { %s7804_s0 = scalar_lea.vmem %s6401_s9, 512  ;;  %p7809_p13 = scmp.lt.s32.totalorder %s6401_s9, %s6401_s9 }
 0x43e   :  { %p7805_p12 = scmp.ne.s32.totalorder %s6401_s9, %s7804_s0  ;;  %p7810_p0 = scmp.lt.s32.totalorder %s7804_s0, %s7804_s0 }
 0x43f   :  { %v3688_v48 = vpop.f32.mrb[60].mxu0 }
 0x440   :  { %v7185_v1 = vpop.f32.mrb[61].mxu0  ;;  %7366 = vmatprep.mubr.f32.mxu0 %v3688_v48  ;;  %p7811_p1 = por %p7810_p0, %p7809_p13 }
 0x442   :  { %p7812_p2 = pnand %p7811_p1, %p7805_p12 }
 0x443   :  { %v3761_v3 = vpop.f32.mrb[104].mxu1 }
 0x444   :  { %v7190_v39 = vpop.f32.mrb[105].mxu1  ;;  %7367 = vmatmul.mubr.f32.gmra.mrb[92].mxu0 %v3761_v3 }
 0x447   :  { %v3834_v40 = vpop.f32.mrb[62].mxu0 }
 0x448   :  { %v7195_v11 = vpop.f32.mrb[63].mxu0  ;;  %7369 = vmatprep.mubr.f32.mxu0 %v3834_v40 }
 0x44b   :  { %v3907_v23 = vpop.f32.mrb[106].mxu1 }
 0x44c   :  { %v7200_v50 = vpop.f32.mrb[107].mxu1  ;;  %7370 = vmatmul.mubr.f32.gmra.mrb[94].mxu0 %v3907_v23 }
 0x44f   :  { %v3980_v29 = vpop.f32.mrb[64].mxu0 }
 0x450   :  { %v7205_v45 = vpop.f32.mrb[65].mxu0  ;;  %7372 = vmatprep.mubr.f32.mxu0 %v3980_v29 }
 0x453   :  { %v4053_v21 = vpop.f32.mrb[108].mxu1 }
 0x454   :  { %v7210_v57 = vpop.f32.mrb[109].mxu1  ;;  %7373 = vmatmul.mubr.f32.gmra.mrb[96].mxu0 %v4053_v21 }
 0x457   :  { %v4126_v24 = vpop.f32.mrb[66].mxu0 }
 0x458   :  { %v7215_v38 = vpop.f32.mrb[67].mxu0  ;;  %7375 = vmatprep.mubr.f32.mxu0 %v4126_v24 }
 0x45b   :  { %v4199_v13 = vpop.f32.mrb[110].mxu1 }
 0x45c   :  { %v7220_v28 = vpop.f32.mrb[111].mxu1  ;;  %7376 = vmatmul.mubr.f32.gmra.mrb[98].mxu0 %v4199_v13 }
 0x45f   :  { %v4272_v41 = vpop.f32.mrb[68].mxu0 }
 0x460   :  { %v7225_v30 = vpop.f32.mrb[69].mxu0  ;;  %7378 = vmatprep.mubr.f32.mxu0 %v4272_v41 }
 0x463   :  { %v4345_v5 = vpop.f32.mrb[112].mxu1 }
 0x464   :  { %v7230_v19 = vpop.f32.mrb[113].mxu1  ;;  %7379 = vmatmul.mubr.f32.gmra.mrb[100].mxu0 %v4345_v5 }
 0x467   :  { %v4418_v53 = vpop.f32.mrb[70].mxu0 }
 0x468   :  { %v7235_v16 = vpop.f32.mrb[71].mxu0  ;;  %7381 = vmatprep.mubr.f32.mxu0 %v4418_v53 }
 0x46b   :  { %v4491_v37 = vpop.f32.mrb[114].mxu1 }
 0x46c   :  { %v7240_v27 = vpop.f32.mrb[115].mxu1  ;;  %7382 = vmatmul.mubr.f32.gmra.mrb[102].mxu0 %v4491_v37 }
 0x46f   :  { %v4564_v6 = vpop.f32.mrb[72].mxu0 }
 0x470   :  { %v7245_v2 = vpop.f32.mrb[73].mxu0  ;;  %7384 = vmatprep.mubr.f32.mxu0 %v4564_v6 }
 0x473   :  { %v4710_v32 = vpop.f32.mrb[74].mxu0 }
 0x474   :  { %v4637_v52 = vpop.f32.mrb[116].mxu1  ;;  %v7255_v33 = vpop.f32.mrb[75].mxu0 }
 0x475   :  { %v7250_v14 = vpop.f32.mrb[117].mxu1  ;;  %7385 = vmatmul.mubr.f32.gmra.mrb[104].mxu0 %v4637_v52 }
 0x476   :  { %7387 = vmatprep.mubr.f32.mxu0 %v4710_v32 }
 0x477   :  { %v4856_v8 = vpop.f32.mrb[76].mxu0 }
 0x478   :  { %v4783_v4 = vpop.f32.mrb[118].mxu1  ;;  %v7265_v56 = vpop.f32.mrb[77].mxu0 }
 0x479   :  { %v7260_v46 = vpop.f32.mrb[119].mxu1  ;;  %7388 = vmatmul.mubr.f32.gmra.mrb[106].mxu0 %v4783_v4 }
 0x47a   :  { %7390 = vmatprep.mubr.f32.mxu0 %v4856_v8 }
 0x47b   :  { %v5002_v44 = vpop.f32.mrb[78].mxu0 }
 0x47c   :  { %v4929_v49 = vpop.f32.mrb[120].mxu1  ;;  %v7275_v58 = vpop.f32.mrb[79].mxu0 }
 0x47d   :  { %v7270_v35 = vpop.f32.mrb[121].mxu1  ;;  %7391 = vmatmul.mubr.f32.gmra.mrb[108].mxu0 %v4929_v49 }
 0x47e   :  { %7393 = vmatprep.mubr.f32.mxu0 %v5002_v44 }
 0x47f   :  { %v5148_v20 = vpop.f32.mrb[80].mxu0 }
 0x480   :  { %v5075_v51 = vpop.f32.mrb[122].mxu1  ;;  %v7285_v42 = vpop.f32.mrb[81].mxu0 }
 0x481   :  { %v7280_v18 = vpop.f32.mrb[123].mxu1  ;;  %7394 = vmatmul.mubr.f32.gmra.mrb[110].mxu0 %v5075_v51 }
 0x482   :  { %7396 = vmatprep.mubr.f32.mxu0 %v5148_v20 }
 0x483   :  { %v5294_v47 = vpop.f32.mrb[82].mxu0 }
 0x484   :  { %v5221_v25 = vpop.f32.mrb[124].mxu1  ;;  %v7295_v0 = vpop.f32.mrb[83].mxu0 }
 0x485   :  { %v7290_v26 = vpop.f32.mrb[125].mxu1  ;;  %7397 = vmatmul.mubr.f32.gmra.mrb[112].mxu0 %v5221_v25 }
 0x486   :  { %7399 = vmatprep.mubr.f32.mxu0 %v5294_v47 }
 0x487   :  { %v5440_v17 = vpop.f32.mrb[84].mxu0 }
 0x488   :  { %v5367_v34 = vpop.f32.mrb[126].mxu1  ;;  %v7305_v12 = vpop.f32.mrb[85].mxu0 }
 0x489   :  { %v7300_v7 = vpop.f32.mrb[127].mxu1  ;;  %7400 = vmatmul.mubr.f32.gmra.mrb[114].mxu0 %v5367_v34 }
 0x48a   :  { %7402 = vmatprep.mubr.f32.mxu0 %v5440_v17 }
 0x48b   :  { %v5586_v61 = vpop.f32.mrb[86].mxu0 }
 0x48c   :  { %v5513_v55 = vpop.f32.mrb[128].mxu1  ;;  %v7315_v59 = vpop.f32.mrb[87].mxu0 }
 0x48d   :  { %v7310_v9 = vpop.f32.mrb[129].mxu1  ;;  %7403 = vmatmul.mubr.f32.gmra.mrb[116].mxu0 %v5513_v55 }
 0x48e   :  { %7405 = vmatprep.mubr.f32.mxu0 %v5586_v61 }
 0x48f   :  { %v5732_v63 = vpop.f32.mrb[88].mxu0 }
 0x490   :  { %v5659_v22 = vpop.f32.mrb[130].mxu1  ;;  %v7325_v31 = vpop.f32.mrb[89].mxu0 }
 0x491   :  { %v7320_v62 = vpop.f32.mrb[131].mxu1  ;;  %7406 = vmatmul.mubr.f32.gmra.mrb[118].mxu0 %v5659_v22 }
 0x492   :  { %7408 = vmatprep.mubr.f32.mxu0 %v5732_v63 }
 0x494   :  { %v5805_v60 = vpop.f32.mrb[132].mxu1 }
 0x495   :  { %v7330_v54 = vpop.f32.mrb[133].mxu1  ;;  %7409 = vmatmul.mubr.f32.gmra.mrb[120].mxu0 %v5805_v60 }
 0x50f   :  { %v7365_v15 = vpop.f32.mrb[90].mxu0 }
 0x510   :  { %v6058_v43 = vmul.f32 %v7365_v15, %v8910_v10  ;;  %v5891_v48 = vpop.f32.mrb[91].mxu0 }
 0x511   :  { %v6057_v1 = vmul.f32 %v8910_v10, %v5891_v48 }
 0x512   :  { %v6097_v3 = vadd.f32 %v8915_v36, %v6058_v43 }
 0x513   :  { %v6096_v39 = vadd.f32 %v8915_v36, %v6057_v1 }
 0x514   :  { %v6134_v40 = vrot.slane %v6097_v3, 4 }
 0x515   :  { %v6128_v11 = vrot.slane %v6096_v39, 4 }
 0x516   :  { %v6135_v23 = vmax.f32 %v6097_v3, %v6134_v40 }
 0x517   :  { %v6129_v50 = vmax.f32 %v6096_v39, %v6128_v11  ;;  %v7368_v29 = vpop.f32.mrb[92].mxu0 }
 0x518   :  { %v6136_v45 = vrot.slane %v6135_v23, 2  ;;  %v6060_v21 = vmul.f32 %v7368_v29, %v8910_v10  ;;  %v5901_v57 = vpop.f32.mrb[93].mxu0 }
 0x519   :  { %v6130_v24 = vrot.slane %v6129_v50, 2  ;;  %v6059_v38 = vmul.f32 %v8910_v10, %v5901_v57 }
 0x51a   :  { %v6137_v13 = vmax.f32 %v6135_v23, %v6136_v45  ;;  %v6099_v28 = vadd.f32 %v8915_v36, %v6060_v21 }
 0x51b   :  { %v6131_v41 = vmax.f32 %v6129_v50, %v6130_v24  ;;  %v6098_v30 = vadd.f32 %v8915_v36, %v6059_v38 }
 0x51c   :  { %v6138_v5 = vrot.slane %v6137_v13, 1  ;;  %v6146_v19 = vrot.slane %v6099_v28, 4 }
 0x51d   :  { %v6132_v53 = vrot.slane %v6131_v41, 1  ;;  %v6140_v16 = vrot.slane %v6098_v30, 4 }
 0x51e   :  { %v6139_v37 = vmax.f32 %v6137_v13, %v6138_v5  ;;  %v6147_v27 = vmax.f32 %v6099_v28, %v6146_v19 }
 0x51f   :  { %v6133_v6 = vmax.f32 %v6131_v41, %v6132_v53  ;;  %v6141_v2 = vmax.f32 %v6098_v30, %v6140_v16  ;;  %v7371_v32 = vpop.f32.mrb[94].mxu0 }
 0x520   :  { %v6148_v52 = vrot.slane %v6147_v27, 2  ;;  %v6062_v33 = vmul.f32 %v7371_v32, %v8910_v10  ;;  %v5911_v14 = vpop.f32.mrb[95].mxu0 }
 0x521   :  { %v6353_v8 = vsel %vm6352_vm2, %v6139_v37, %v6133_v6  ;;  %v6142_v4 = vrot.slane %v6141_v2, 2  ;;  %v6061_v56 = vmul.f32 %v8910_v10, %v5911_v14 }
 0x522   :  { %v6149_v46 = vmax.f32 %v6147_v27, %v6148_v52  ;;  %v6101_v44 = vadd.f32 %v8915_v36, %v6062_v33 }
 0x523   :  { %v6143_v49 = vmax.f32 %v6141_v2, %v6142_v4  ;;  %v6100_v58 = vadd.f32 %v8915_v36, %v6061_v56 }
 0x524   :  { %v6150_v35 = vrot.slane %v6149_v46, 1  ;;  %v6158_v20 = vrot.slane %v6101_v44, 4 }
 0x525   :  { %v6144_v51 = vrot.slane %v6143_v49, 1  ;;  %v6152_v42 = vrot.slane %v6100_v58, 4 }
 0x526   :  { %v6159_v18 = vmax.f32 %v6101_v44, %v6158_v20  ;;  %v6151_v26 = vmax.f32 %v6149_v46, %v6150_v35 }
 0x527   :  { %v6145_v47 = vmax.f32 %v6143_v49, %v6144_v51  ;;  %v6153_v25 = vmax.f32 %v6100_v58, %v6152_v42  ;;  %v7374_v0 = vpop.f32.mrb[96].mxu0 }
 0x528   :  { %v6160_v17 = vrot.slane %v6159_v18, 2  ;;  %v6064_v34 = vmul.f32 %v7374_v0, %v8910_v10  ;;  %v5921_v12 = vpop.f32.mrb[97].mxu0 }
 0x529   :  { %v6355_v7 = vsel %vm6354_vm3, %v6145_v47, %v6353_v8  ;;  %v6154_v61 = vrot.slane %v6153_v25, 2  ;;  %v6063_v55 = vmul.f32 %v8910_v10, %v5921_v12 }
 0x52a   :  { %v6161_v59 = vmax.f32 %v6159_v18, %v6160_v17  ;;  %v6357_v9 = vsel %vm6356_vm4, %v6151_v26, %v6355_v7  ;;  %v6103_v63 = vadd.f32 %v8915_v36, %v6064_v34 }
 0x52b   :  { %v6155_v22 = vmax.f32 %v6153_v25, %v6154_v61  ;;  %v6102_v31 = vadd.f32 %v8915_v36, %v6063_v55 }
 0x52c   :  { %v6162_v62 = vrot.slane %v6161_v59, 1  ;;  %v6170_v60 = vrot.slane %v6103_v63, 4 }
 0x52d   :  { %v6156_v54 = vrot.slane %v6155_v22, 1  ;;  %v6164_v15 = vrot.slane %v6102_v31, 4 }
 0x52e   :  { %v6171_v43 = vmax.f32 %v6103_v63, %v6170_v60  ;;  %v6163_v39 = vmax.f32 %v6161_v59, %v6162_v62 }
 0x52f   :  { %v6157_v48 = vmax.f32 %v6155_v22, %v6156_v54  ;;  %v6165_v1 = vmax.f32 %v6102_v31, %v6164_v15  ;;  %v7377_v3 = vpop.f32.mrb[98].mxu0 }
 0x530   :  { %v6172_v40 = vrot.slane %v6171_v43, 2  ;;  %v6066_v11 = vmul.f32 %v7377_v3, %v8910_v10  ;;  %v5931_v23 = vpop.f32.mrb[99].mxu0 }
 0x531   :  { %v6359_v50 = vsel %vm6358_vm5, %v6157_v48, %v6357_v9  ;;  %v6166_v29 = vrot.slane %v6165_v1, 2  ;;  %v6065_v45 = vmul.f32 %v8910_v10, %v5931_v23 }
 0x532   :  { %v6173_v21 = vmax.f32 %v6171_v43, %v6172_v40  ;;  %v6105_v57 = vadd.f32 %v8915_v36, %v6066_v11  ;;  %v6361_v24 = vsel %vm6360_vm6, %v6163_v39, %v6359_v50 }
 0x533   :  { %v6167_v38 = vmax.f32 %v6165_v1, %v6166_v29  ;;  %v6104_v13 = vadd.f32 %v8915_v36, %v6065_v45 }
 0x534   :  { %v6174_v28 = vrot.slane %v6173_v21, 1  ;;  %v6182_v41 = vrot.slane %v6105_v57, 4 }
 0x535   :  { %v6168_v30 = vrot.slane %v6167_v38, 1  ;;  %v6176_v5 = vrot.slane %v6104_v13, 4 }
 0x536   :  { %v6183_v19 = vmax.f32 %v6105_v57, %v6182_v41  ;;  %v6175_v27 = vmax.f32 %v6173_v21, %v6174_v28 }
 0x537   :  { %v6169_v53 = vmax.f32 %v6167_v38, %v6168_v30  ;;  %v6177_v16 = vmax.f32 %v6104_v13, %v6176_v5  ;;  %v7380_v37 = vpop.f32.mrb[100].mxu0 }
 0x538   :  { %v6184_v6 = vrot.slane %v6183_v19, 2  ;;  %v6068_v2 = vmul.f32 %v7380_v37, %v8910_v10  ;;  %v5941_v32 = vpop.f32.mrb[101].mxu0 }
 0x539   :  { %v6178_v52 = vrot.slane %v6177_v16, 2  ;;  %v6067_v33 = vmul.f32 %v8910_v10, %v5941_v32  ;;  %v6363_v14 = vsel %vm6362_vm7, %v6169_v53, %v6361_v24 }
 0x53a   :  { %v6185_v8 = vmax.f32 %v6183_v19, %v6184_v6  ;;  %v6107_v4 = vadd.f32 %v8915_v36, %v6068_v2  ;;  %v6365_v56 = vsel %vm6364_vm8, %v6175_v27, %v6363_v14 }
 0x53b   :  { %v6179_v46 = vmax.f32 %v6177_v16, %v6178_v52  ;;  %v6106_v44 = vadd.f32 %v8915_v36, %v6067_v33  ;;  %6391 = vst [vmem:[#allocation11] sm:$0xff] %v6365_v56 }
 0x53c   :  { %v6186_v49 = vrot.slane %v6185_v8, 1  ;;  %v6194_v58 = vrot.slane %v6107_v4, 4 }
 0x53d   :  { %v6180_v35 = vrot.slane %v6179_v46, 1  ;;  %v6188_v20 = vrot.slane %v6106_v44, 4 }
 0x53e   :  { %v6187_v51 = vmax.f32 %v6185_v8, %v6186_v49  ;;  %v6195_v42 = vmax.f32 %v6107_v4, %v6194_v58 }
 0x53f   :  { %v6181_v18 = vmax.f32 %v6179_v46, %v6180_v35  ;;  %v6189_v47 = vmax.f32 %v6106_v44, %v6188_v20  ;;  %v7383_v25 = vpop.f32.mrb[102].mxu0 }
 0x540   :  { %v6196_v0 = vrot.slane %v6195_v42, 2  ;;  %v6070_v26 = vmul.f32 %v7383_v25, %v8910_v10  ;;  %v5951_v17 = vpop.f32.mrb[103].mxu0 }
 0x541   :  { %v6366_v34 = vsel %vm6352_vm2, %v6187_v51, %v6181_v18  ;;  %v6190_v12 = vrot.slane %v6189_v47, 2  ;;  %v6069_v7 = vmul.f32 %v8910_v10, %v5951_v17 }
 0x542   :  { %v6197_v61 = vmax.f32 %v6195_v42, %v6196_v0  ;;  %v6109_v55 = vadd.f32 %v8915_v36, %v6070_v26 }
 0x543   :  { %v6191_v59 = vmax.f32 %v6189_v47, %v6190_v12  ;;  %v6108_v9 = vadd.f32 %v8915_v36, %v6069_v7 }
 0x544   :  { %v6198_v63 = vrot.slane %v6197_v61, 1  ;;  %v6206_v22 = vrot.slane %v6109_v55, 4 }
 0x545   :  { %v6192_v31 = vrot.slane %v6191_v59, 1  ;;  %v6200_v62 = vrot.slane %v6108_v9, 4 }
 0x546   :  { %v6207_v60 = vmax.f32 %v6109_v55, %v6206_v22  ;;  %v6199_v43 = vmax.f32 %v6197_v61, %v6198_v63 }
 0x547   :  { %v6193_v54 = vmax.f32 %v6191_v59, %v6192_v31  ;;  %v6201_v15 = vmax.f32 %v6108_v9, %v6200_v62 }
 0x548   :  { %v6208_v48 = vrot.slane %v6207_v60, 2  ;;  %v7386_v1 = vpop.f32.mrb[104].mxu0 }
 0x549   :  { %v6367_v3 = vsel %vm6354_vm3, %v6193_v54, %v6366_v34  ;;  %v6202_v39 = vrot.slane %v6201_v15, 2  ;;  %v6072_v40 = vmul.f32 %v7386_v1, %v8910_v10  ;;  %v5961_v11 = vpop.f32.mrb[105].mxu0 }
 0x54a   :  { %v6209_v23 = vmax.f32 %v6207_v60, %v6208_v48  ;;  %v6368_v50 = vsel %vm6356_vm4, %v6199_v43, %v6367_v3  ;;  %v6071_v29 = vmul.f32 %v8910_v10, %v5961_v11 }
 0x54b   :  { %v6203_v45 = vmax.f32 %v6201_v15, %v6202_v39  ;;  %v6111_v21 = vadd.f32 %v8915_v36, %v6072_v40 }
 0x54c   :  { %v6210_v57 = vrot.slane %v6209_v23, 1  ;;  %v6110_v24 = vadd.f32 %v8915_v36, %v6071_v29  ;;  %v7389_v38 = vpop.f32.mrb[106].mxu0 }
 0x54d   :  { %v6204_v13 = vrot.slane %v6203_v45, 1  ;;  %v6218_v28 = vrot.slane %v6111_v21, 4  ;;  %v6074_v41 = vmul.f32 %v7389_v38, %v8910_v10  ;;  %v5971_v30 = vpop.f32.mrb[107].mxu0 }
 0x54e   :  { %v6212_v5 = vrot.slane %v6110_v24, 4  ;;  %v6073_v19 = vmul.f32 %v8910_v10, %v5971_v30  ;;  %v6211_v27 = vmax.f32 %v6209_v23, %v6210_v57 }
 0x54f   :  { %v6205_v53 = vmax.f32 %v6203_v45, %v6204_v13  ;;  %v6219_v16 = vmax.f32 %v6111_v21, %v6218_v28  ;;  %v6113_v37 = vadd.f32 %v8915_v36, %v6074_v41 }
 0x550   :  { %v6213_v6 = vmax.f32 %v6110_v24, %v6212_v5  ;;  %v6112_v2 = vadd.f32 %v8915_v36, %v6073_v19  ;;  %v7392_v32 = vpop.f32.mrb[108].mxu0 }
 0x551   :  { %v6369_v52 = vsel %vm6358_vm5, %v6205_v53, %v6368_v50  ;;  %v6220_v33 = vrot.slane %v6219_v16, 2  ;;  %v6230_v14 = vrot.slane %v6113_v37, 4  ;;  %v6076_v8 = vmul.f32 %v7392_v32, %v8910_v10  ;;  %v5981_v4 = vpop.f32.mrb[109].mxu0 }
 0x552   :  { %v6214_v56 = vrot.slane %v6213_v6, 2  ;;  %v6224_v46 = vrot.slane %v6112_v2, 4  ;;  %v6075_v44 = vmul.f32 %v8910_v10, %v5981_v4  ;;  %v8967_v49 = vsel %vm6360_vm6, %v6211_v27, %v6369_v52 }
 0x553   :  { %v8969_v58 = vmax.f32 %v6219_v16, %v6220_v33  ;;  %v6231_v35 = vmax.f32 %v6113_v37, %v6230_v14  ;;  %v6115_v20 = vadd.f32 %v8915_v36, %v6076_v8 }
 0x554   :  { %v8972_v51 = vmax.f32 %v6213_v6, %v6214_v56  ;;  %v6225_v42 = vmax.f32 %v6112_v2, %v6224_v46  ;;  %v6114_v18 = vadd.f32 %v8915_v36, %v6075_v44  ;;  %v7395_v47 = vpop.f32.mrb[110].mxu0 }
 0x555   :  { %v6232_v25 = vrot.slane %v6231_v35, 2  ;;  %v6242_v0 = vrot.slane %v6115_v20, 4  ;;  %v6078_v26 = vmul.f32 %v7395_v47, %v8910_v10  ;;  %v5991_v17 = vpop.f32.mrb[111].mxu0  ;;  %v6222_v61 = vrot.slane %v8969_v58, 1 }
 0x556   :  { %v6226_v34 = vrot.slane %v6225_v42, 2  ;;  %v6236_v12 = vrot.slane %v6114_v18, 4  ;;  %v6077_v7 = vmul.f32 %v8910_v10, %v5991_v17  ;;  %v6216_v63 = vrot.slane %v8972_v51, 1 }
 0x557   :  { %v6233_v55 = vmax.f32 %v6231_v35, %v6232_v25  ;;  %v6243_v59 = vmax.f32 %v6115_v20, %v6242_v0  ;;  %v6117_v9 = vadd.f32 %v8915_v36, %v6078_v26  ;;  %v6223_v26 = vmax.f32 %v8969_v58, %v6222_v61 }
 0x558   :  { %v6227_v22 = vmax.f32 %v6225_v42, %v6226_v34  ;;  %v6237_v31 = vmax.f32 %v6114_v18, %v6236_v12  ;;  %v6116_v62 = vadd.f32 %v8915_v36, %v6077_v7  ;;  %v7398_v60 = vpop.f32.mrb[112].mxu0 }
 0x559   :  { %v6234_v54 = vrot.slane %v6233_v55, 1  ;;  %v6244_v15 = vrot.slane %v6243_v59, 2  ;;  %v6254_v43 = vrot.slane %v6117_v9, 4  ;;  %v6080_v48 = vmul.f32 %v7398_v60, %v8910_v10  ;;  %v6001_v1 = vpop.f32.mrb[113].mxu0 }
 0x55a   :  { %v6228_v3 = vrot.slane %v6227_v22, 1  ;;  %v6238_v39 = vrot.slane %v6237_v31, 2  ;;  %v6248_v40 = vrot.slane %v6116_v62, 4  ;;  %v6079_v11 = vmul.f32 %v8910_v10, %v6001_v1 }
 0x55b   :  { %v6235_v23 = vmax.f32 %v6233_v55, %v6234_v54  ;;  %v6245_v50 = vmax.f32 %v6243_v59, %v6244_v15  ;;  %v6255_v29 = vmax.f32 %v6117_v9, %v6254_v43  ;;  %v6119_v45 = vadd.f32 %v8915_v36, %v6080_v48 }
 0x55c   :  { %v6229_v21 = vmax.f32 %v6227_v22, %v6228_v3  ;;  %v6239_v57 = vmax.f32 %v6237_v31, %v6238_v39  ;;  %v6249_v24 = vmax.f32 %v6116_v62, %v6248_v40  ;;  %v6118_v38 = vadd.f32 %v8915_v36, %v6079_v11  ;;  %v7401_v13 = vpop.f32.mrb[114].mxu0 }
 0x55d   :  { %v6246_v28 = vrot.slane %v6245_v50, 1  ;;  %v6256_v41 = vrot.slane %v6255_v29, 2  ;;  %v6266_v30 = vrot.slane %v6119_v45, 4  ;;  %v6082_v5 = vmul.f32 %v7401_v13, %v8910_v10  ;;  %v6011_v19 = vpop.f32.mrb[115].mxu0 }
 0x55e   :  { %v6373_v53 = vsel %vm6352_vm2, %v6235_v23, %v6229_v21  ;;  %v6240_v16 = vrot.slane %v6239_v57, 1  ;;  %v6250_v37 = vrot.slane %v6249_v24, 2  ;;  %v6260_v27 = vrot.slane %v6118_v38, 4 }
 0x55f   :  { %v6247_v6 = vmax.f32 %v6245_v50, %v6246_v28  ;;  %v6257_v2 = vmax.f32 %v6255_v29, %v6256_v41  ;;  %v6267_v32 = vmax.f32 %v6119_v45, %v6266_v30  ;;  %v6121_v52 = vadd.f32 %v8915_v36, %v6082_v5 }
 0x560   :  { %v6241_v33 = vmax.f32 %v6239_v57, %v6240_v16  ;;  %v6251_v14 = vmax.f32 %v6249_v24, %v6250_v37  ;;  %v6261_v8 = vmax.f32 %v6118_v38, %v6260_v27  ;;  %v6081_v4 = vmul.f32 %v8910_v10, %v6011_v19  ;;  %v7404_v56 = vpop.f32.mrb[116].mxu0 }
 0x561   :  { %v6258_v46 = vrot.slane %v6257_v2, 1  ;;  %v6268_v44 = vrot.slane %v6267_v32, 2  ;;  %v6278_v35 = vrot.slane %v6121_v52, 4  ;;  %v6084_v20 = vmul.f32 %v7404_v56, %v8910_v10  ;;  %v6021_v42 = vpop.f32.mrb[117].mxu0 }
 0x562   :  { %v6374_v18 = vsel %vm6354_vm3, %v6241_v33, %v6373_v53  ;;  %v6252_v47 = vrot.slane %v6251_v14, 1  ;;  %v6262_v25 = vrot.slane %v6261_v8, 2  ;;  %v6120_v0 = vadd.f32 %v8915_v36, %v6081_v4 }
 0x563   :  { %v6375_v17 = vsel %vm6356_vm4, %v6247_v6, %v6374_v18  ;;  %v6269_v34 = vmax.f32 %v6267_v32, %v6268_v44  ;;  %v6279_v12 = vmax.f32 %v6121_v52, %v6278_v35  ;;  %v6123_v9 = vadd.f32 %v8915_v36, %v6084_v20 }
 0x564   :  { %v6253_v7 = vmax.f32 %v6251_v14, %v6252_v47  ;;  %v6263_v55 = vmax.f32 %v6261_v8, %v6262_v25  ;;  %v6272_v59 = vrot.slane %v6120_v0, 4  ;;  %v7407_v22 = vpop.f32.mrb[118].mxu0  ;;  %v6217_v31 = vmax.f32 %v8972_v51, %v6216_v63 }
 0x565   :  { %v6280_v62 = vrot.slane %v6279_v12, 2  ;;  %v6083_v60 = vmul.f32 %v8910_v10, %v6021_v42  ;;  %v6086_v54 = vmul.f32 %v7407_v22, %v8910_v10  ;;  %v6031_v15 = vpop.f32.mrb[119].mxu0  ;;  %v6259_v43 = vmax.f32 %v6257_v2, %v6258_v46 }
 0x566   :  { %v6376_v58 = vsel %vm6358_vm5, %v6253_v7, %v6375_v17  ;;  %v6273_v61 = vmax.f32 %v6120_v0, %v6272_v59  ;;  %v6290_v48 = vrot.slane %v6123_v9, 4  ;;  %v6270_v1 = vrot.slane %v6269_v34, 1 }
 0x567   :  { %v6281_v3 = vmax.f32 %v6279_v12, %v6280_v62  ;;  %v6122_v39 = vadd.f32 %v8915_v36, %v6083_v60  ;;  %v6125_v40 = vadd.f32 %v8915_v36, %v6086_v54  ;;  %v6264_v11 = vrot.slane %v6263_v55, 1 }
 0x568   :  { %v6274_v23 = vrot.slane %v6273_v61, 2  ;;  %v6291_v51 = vmax.f32 %v6123_v9, %v6290_v48  ;;  %v6085_v63 = vmul.f32 %v8910_v10, %v6031_v15  ;;  %v7410_v50 = vpop.f32.mrb[120].mxu0  ;;  %v6371_v33 = vsel %vm6362_vm7, %v6217_v31, %v8967_v49 }
 0x569   :  { %v6282_v29 = vrot.slane %v6281_v3, 1  ;;  %v6284_v45 = vrot.slane %v6122_v39, 4  ;;  %v6302_v21 = vrot.slane %v6125_v40, 4  ;;  %v6088_v57 = vmul.f32 %v7410_v50, %v8910_v10  ;;  %v6041_v24 = vpop.f32.mrb[121].mxu0 }
 0x56a   :  { %v6275_v38 = vmax.f32 %v6273_v61, %v6274_v23  ;;  %v6292_v13 = vrot.slane %v6291_v51, 2  ;;  %v6124_v28 = vadd.f32 %v8915_v36, %v6085_v63  ;;  %v6087_v41 = vmul.f32 %v8910_v10, %v6041_v24 }
 0x56b   :  { %v6283_v30 = vmax.f32 %v6281_v3, %v6282_v29  ;;  %v6285_v5 = vmax.f32 %v6122_v39, %v6284_v45  ;;  %v6303_v19 = vmax.f32 %v6125_v40, %v6302_v21  ;;  %v6127_v53 = vadd.f32 %v8915_v36, %v6088_v57 }
 0x56c   :  { %v6276_v16 = vrot.slane %v6275_v38, 1  ;;  %v6293_v37 = vmax.f32 %v6291_v51, %v6292_v13  ;;  %v6296_v27 = vrot.slane %v6124_v28, 4  ;;  %v6126_v6 = vadd.f32 %v8915_v36, %v6087_v41 }
 0x56d   :  { %v6286_v2 = vrot.slane %v6285_v5, 2  ;;  %v6304_v32 = vrot.slane %v6303_v19, 2  ;;  %v6314_v52 = vrot.slane %v6127_v53, 4  ;;  %v6265_v14 = vmax.f32 %v6263_v55, %v6264_v11 }
 0x56e   :  { %v6277_v8 = vmax.f32 %v6275_v38, %v6276_v16  ;;  %v6297_v4 = vmax.f32 %v6124_v28, %v6296_v27  ;;  %v6308_v10 = vrot.slane %v6126_v6, 4  ;;  %v6372_v35 = vsel %vm6364_vm8, %v6223_v26, %v6371_v33 }
 0x56f   :  { %v6287_v56 = vmax.f32 %v6285_v5, %v6286_v2  ;;  %v6305_v46 = vmax.f32 %v6303_v19, %v6304_v32  ;;  %v6315_v44 = vmax.f32 %v6127_v53, %v6314_v52  ;;  %v6294_v42 = vrot.slane %v6293_v37, 1  ;;  %6392 = vst [vmem:[#allocation11 + $0x8] sm:$0xff] %v6372_v35 }
 0x570   :  { %v6380_v20 = vsel %vm6352_vm2, %v6283_v30, %v6277_v8  ;;  %v6298_v18 = vrot.slane %v6297_v4, 2  ;;  %v6309_v36 = vmax.f32 %v6126_v6, %v6308_v10  ;;  %v6271_v47 = vmax.f32 %v6269_v34, %v6270_v1 }
 0x571   :  { %v6288_v25 = vrot.slane %v6287_v56, 1  ;;  %v6316_v0 = vrot.slane %v6315_v44, 2  ;;  %v6377_v49 = vsel %vm6360_vm6, %v6259_v43, %v6376_v58  ;;  %v6306_v59 = vrot.slane %v6305_v46, 1 }
 0x572   :  { %v6299_v17 = vmax.f32 %v6297_v4, %v6298_v18  ;;  %v6310_v12 = vrot.slane %v6309_v36, 2  ;;  %v6378_v7 = vsel %vm6362_vm7, %v6265_v14, %v6377_v49  ;;  %v6295_v22 = vmax.f32 %v6293_v37, %v6294_v42 }
 0x573   :  { %v6289_v55 = vmax.f32 %v6287_v56, %v6288_v25  ;;  %v6317_v9 = vmax.f32 %v6315_v44, %v6316_v0  ;;  %v6379_v26 = vsel %vm6364_vm8, %v6271_v47, %v6378_v7  ;;  %v6307_v58 = vmax.f32 %v6305_v46, %v6306_v59 }
 0x574   :  { %v6300_v31 = vrot.slane %v6299_v17, 1  ;;  %v6311_v62 = vmax.f32 %v6309_v36, %v6310_v12  ;;  %6393 = vst [vmem:[#allocation11 + $0x10] sm:$0xff] %v6379_v26 }
 0x575   :  { %v6381_v60 = vsel %vm6354_vm3, %v6289_v55, %v6380_v20  ;;  %v6318_v34 = vrot.slane %v6317_v9, 1 }
 0x576   :  { %v6301_v54 = vmax.f32 %v6299_v17, %v6300_v31  ;;  %v6382_v15 = vsel %vm6356_vm4, %v6295_v22, %v6381_v60  ;;  %v6312_v43 = vrot.slane %v6311_v62, 1 }
 0x577   :  { %v6319_v1 = vmax.f32 %v6317_v9, %v6318_v34 }
 0x578   :  { %v6383_v61 = vsel %vm6358_vm5, %v6301_v54, %v6382_v15  ;;  %v6313_v48 = vmax.f32 %v6311_v62, %v6312_v43 }
 0x579   :  { %v6384_v3 = vsel %vm6360_vm6, %v6307_v58, %v6383_v61 }
 0x57a   :  { %v6385_v39 = vsel %vm6362_vm7, %v6313_v48, %v6384_v3 }
 0x57b   :  { %v6386_v40 = vsel %vm6364_vm8, %v6319_v1, %v6385_v39 }
 0x57c   :  { %6394 = vst [vmem:[#allocation11 + $0x18] sm:$0xff] %v6386_v40 }
 0x57d   :  { %7815 = shalt.err (!%p7812_p2)
}
 0x57e   :  { %s7816_s24 = scalar_lea.hbm %s9045_s10, 512 }
 0x57f   :  { %p7817_p3 = scmp.ne.s32.totalorder %s9045_s10, %s7816_s24  ;;  %p7820_p4 = scmp.lt.u32.totalorder %s7816_s24, %s9045_s10 }
 0x581   :  { %p7822_p5 = pnand %p7820_p4, %p7817_p3 }
 0x583   :  { %7825 = shalt.err (!%p7822_p5)
}
 0x584   :  { %6406 = dma.vmem_to_hbm [thread:$0]  %s6401_s9, 512, %s9045_s10, [#allocation4], %s7836_s25, %s7836_s25, %s7837_s26  }
 0x585   :  { %7832 = dma.done.wait [#allocation4], 512  }
 0x586   :  { %7833 = vsyncadd [#allocation4], 4294966784 }
 0x587   :  { %6410 = vsyncpa [#allocation3], 1 }
 0x588   :  { %6411 = vsyncpa [#allocation6], 1 }
 0x589   :  { %6412 = vsyncpa [#allocation9], 1 }
 0x58a   :  { %6413 = vsyncpa [#allocation4], 1 }

</bundles_post_ra>
